<compile_context>
chip_gen: v6e
topology: v6e:2x2x1
jax: 0.10.0
libtpu: 0.0.40
codegen_flags: <defaults>
</compile_context>

<pallas_src>
import functools
import math

import jax
import jax.numpy as jnp
from jax.experimental import pallas as pl
from jax.experimental.pallas import tpu as pltpu


def _layer_norm(x, w, b, eps=1e-5):
    # x: (R, E) fp32, w/b: (1, E) fp32 -- LayerNorm over last dim, biased variance (PyTorch).
    mean = jnp.mean(x, axis=-1, keepdims=True)
    var = jnp.mean((x - mean) ** 2, axis=-1, keepdims=True)
    return (x - mean) * jax.lax.rsqrt(var + eps) * w + b


def encoder_kernel(src_ref, wq_ref, wk_ref, wv_ref, wo_ref, w1_ref, w2_ref,
                   be_ref, b1_ref, out_ref, *, num_heads, kv_tile):
    f32, bf16 = jnp.float32, jnp.bfloat16
    Bt, S, E = src_ref.shape
    H = num_heads
    hd = E // H
    num_kv = S // kv_tile

    # Packed per-channel vectors: rows = [bq*scale, bk, bv, bo, ln_w, ln_b, b2, pad].
    bias = be_ref[...]
    bq, bk, bv, bo = bias[0:1], bias[1:2], bias[2:3], bias[3:4]
    lnw, lnb, b2 = bias[4:5], bias[5:6], bias[6:7]
    b1 = b1_ref[...]                                           # (1, F)

    x = src_ref[...].astype(f32).reshape(Bt * S, E)            # residual path in fp32
    x_bf = x.astype(bf16)

    # Q projection; 1/sqrt(hd) already folded into wq/bq wrapper-side.
    q = jnp.dot(x_bf, wq_ref[...], preferred_element_type=f32) + bq
    qh = jnp.transpose(q.reshape(Bt, S, H, hd), (0, 2, 1, 3))
    qh = qh.reshape(Bt * H, S, hd).astype(bf16)

    # ---- online-softmax attention over K/V tiles (score scratch bounded to S x kv_tile) ---
    def kv_step(t, carry):
        m, l, acc = carry
        start = t * kv_tile
        if not isinstance(start, int):
            start = pl.multiple_of(start, kv_tile)
        src_t = src_ref[:, pl.ds(start, kv_tile), :].astype(bf16).reshape(Bt * kv_tile, E)
        k_t = jnp.dot(src_t, wk_ref[...], preferred_element_type=f32) + bk
        v_t = jnp.dot(src_t, wv_ref[...], preferred_element_type=f32) + bv
        kh = jnp.transpose(k_t.reshape(Bt, kv_tile, H, hd), (0, 2, 1, 3))
        kh = kh.reshape(Bt * H, kv_tile, hd).astype(bf16)
        vh = jnp.transpose(v_t.reshape(Bt, kv_tile, H, hd), (0, 2, 1, 3))
        vh = vh.reshape(Bt * H, kv_tile, hd).astype(bf16)

        s = jnp.einsum('hqd,hkd->hqk', qh, kh, preferred_element_type=f32)
        m_new = jnp.maximum(m, jnp.max(s, axis=-1, keepdims=True))
        alpha = jnp.exp(m - m_new)
        p = jnp.exp(s - m_new)
        l_new = alpha * l + jnp.sum(p, axis=-1, keepdims=True)
        acc_new = alpha * acc + jnp.einsum('hqk,hkd->hqd', p.astype(bf16), vh,
                                           preferred_element_type=f32)
        return m_new, l_new, acc_new

    m0 = jnp.full((Bt * H, S, 1), -jnp.inf, f32)
    l0 = jnp.zeros((Bt * H, S, 1), f32)
    acc0 = jnp.zeros((Bt * H, S, hd), f32)
    if num_kv == 1:                          # single tile: no loop needed (trace-time branch)
        m, l, acc = kv_step(0, (m0, l0, acc0))
    else:
        m, l, acc = jax.lax.fori_loop(0, num_kv, kv_step, (m0, l0, acc0))

    o = acc * pl.reciprocal(l, approx=False)                   # exact normalization
    o = jnp.transpose(o.reshape(Bt, H, S, hd), (0, 2, 1, 3)).reshape(Bt * S, E)
    attn = jnp.dot(o.astype(bf16), wo_ref[...], preferred_element_type=f32) + bo

    # ---- residual + LayerNorm (shared norm module, fp32) ----------------------------------
    x1 = _layer_norm(attn + x, lnw, lnb)

    # ---- FFN: Linear -> (Dropout p=0) -> ReLU -> Linear -----------------------------------
    h1 = jnp.dot(x1.astype(bf16), w1_ref[...], preferred_element_type=f32) + b1
    h1 = jnp.maximum(h1, 0.0)
    ff = jnp.dot(h1.astype(bf16), w2_ref[...], preferred_element_type=f32) + b2

    out = _layer_norm(ff + x1, lnw, lnb)                        # same norm weights again
    out_ref[...] = out.reshape(Bt, S, E).astype(out_ref.dtype)


def prepare_encoder_params(params, num_heads):
    """One-time layout plumbing: transpose weights to (in, out), cast to bf16, fold
    1/sqrt(head_dim) into wq/bq, pack the small per-channel vectors.  Call once and reuse
    (keeps the transpose/cast pass off the per-forward hot path)."""
    f32, bf16 = jnp.float32, jnp.bfloat16
    E = params["wo"].shape[0]
    scale = 1.0 / math.sqrt(E // num_heads)

    wqkv = params["wqkv"].astype(f32)
    bqkv = params["bqkv"].astype(f32).reshape(-1)
    wq = (jnp.transpose(wqkv[0 * E:1 * E]) * scale).astype(bf16)
    wk = jnp.transpose(wqkv[1 * E:2 * E]).astype(bf16)
    wv = jnp.transpose(wqkv[2 * E:3 * E]).astype(bf16)
    bias_e = jnp.stack([
        bqkv[0 * E:1 * E] * scale,                     # bq (scale folded in)
        bqkv[1 * E:2 * E],                             # bk
        bqkv[2 * E:3 * E],                             # bv
        params["bo"].astype(f32).reshape(-1),          # bo
        params["lnw"].astype(f32).reshape(-1),         # LayerNorm weight
        params["lnb"].astype(f32).reshape(-1),         # LayerNorm bias
        params["b2"].astype(f32).reshape(-1),          # FFN linear2 bias
        jnp.zeros((E,), f32),                          # pad to 8 rows (one sublane tile)
    ], axis=0)
    return {
        "wq": wq, "wk": wk, "wv": wv,
        "wo": jnp.transpose(params["wo"]).astype(bf16),
        "w1": jnp.transpose(params["w1"]).astype(bf16),
        "w2": jnp.transpose(params["w2"]).astype(bf16),
        "bias_e": bias_e,
        "b1": params["b1"].astype(f32).reshape(1, -1),
    }


def _vmem_capacity_bytes():
    try:
        cap = int(pltpu.get_tpu_info().vmem_capacity_bytes)
    except Exception:                                  # unknown chip / older API
        cap = 64 << 20                                 # conservative: v7x per-core VMEM
    return max(cap, 32 << 20)


def _vmem_budget_bytes():
    cap = _vmem_capacity_bytes()
    if cap <= (64 << 20):                              # v7x: 64 MiB physical -> target ~56 MiB
        return cap - (8 << 20)
    return min(cap - (28 << 20), 100 << 20)            # v5e/v6e: fill ~100 MiB of 128


def _vmem_footprint(bt, S, E, F, H, kv_tile, weight_bytes):
    io = 4 * bt * S * E * 4                            # src + out blocks, double-buffered
    act = bt * S * E * (6 * 4 + 3 * 2)                 # fp32 x/q/acc/x1/ff/out + bf16 copies
    act += bt * S * F * (4 + 2)                        # FFN hidden (fp32 + bf16)
    act += 2 * bt * H * S * kv_tile * 4                # score + prob tile (fp32)
    act += 4 * bt * kv_tile * E * 2                    # per-tile K/V projections
    act += 2 * bt * H * S * 4                          # running max / sum
    return io + weight_bytes + act + (2 << 20)         # + fixed slack


def _pick_batch_block(B, S, E, F, H, kv_tile, weight_bytes, budget):
    divisors = [d for d in range(1, B + 1) if B % d == 0]
    feasible = [d for d in divisors
                if _vmem_footprint(d, S, E, F, H, kv_tile, weight_bytes) <= budget]
    if not feasible:
        return 1
    # Prefer >= 2 grid blocks when B > 1 so a v7x megacore can split the batch axis.
    multi = [d for d in feasible if B // d >= 2]
    pool = multi if multi else feasible
    best = max(pool)
    # Prefer MXU-aligned row counts (bt*S multiple of 256) if it does not halve the block.
    aligned = [d for d in pool if (d * S) % 256 == 0 and 2 * d >= best]
    return max(aligned) if aligned else best


def _pick_kv_tile(S, target=512):
    if S <= target:
        return S
    for align in (128, 8, 1):
        for t in range(target, 0, -1):
            if S % t == 0 and t % align == 0:
                return t
    return S


def encoder_forward(src, prepped, num_heads, *, kv_tile=None):
    B, S, E = src.shape
    F = prepped["b1"].shape[-1]
    H = num_heads
    assert E % H == 0
    if kv_tile is None:
        kv_tile = _pick_kv_tile(S)
    assert S % kv_tile == 0, "kv_tile must divide the sequence length"

    weight_bytes = sum(int(a.size) * a.dtype.itemsize for a in prepped.values())
    budget = _vmem_budget_bytes()
    bt = _pick_batch_block(B, S, E, F, H, kv_tile, weight_bytes, budget)
    grid_b = B // bt

    footprint = _vmem_footprint(bt, S, E, F, H, kv_tile, weight_bytes)
    # Never request less VMEM than the estimated requirement (review: silent under-request).
    vmem_limit = int(max(16 << 20, min(footprint + (2 << 20), budget)))
    if footprint > budget:
        vmem_limit = int(footprint + (2 << 20))

    kernel = functools.partial(encoder_kernel, num_heads=H, kv_tile=kv_tile)
    args = (src, prepped["wq"], prepped["wk"], prepped["wv"], prepped["wo"],
            prepped["w1"], prepped["w2"], prepped["bias_e"], prepped["b1"])

    def _call(single_buffer_weights):
        def resident(shape):
            idx = lambda b, _n=len(shape): (0,) * _n
            if single_buffer_weights:
                # Grid-invariant operand: double-buffering it is pure VMEM waste.
                return pl.BlockSpec(shape, idx, pipeline_mode=pl.Buffered(1))
            return pl.BlockSpec(shape, idx)

        grid_spec = pltpu.PrefetchScalarGridSpec(
            num_scalar_prefetch=0,
            grid=(grid_b,),
            in_specs=[
                pl.BlockSpec((bt, S, E), lambda b: (b, 0, 0)),           # src block
                resident((E, E)), resident((E, E)), resident((E, E)),    # wq, wk, wv
                resident((E, E)),                                        # wo
                resident((E, F)), resident((F, E)),                      # ffn w1, w2
                resident((8, E)), resident((1, F)),                      # packed biases, b1
            ],
            out_specs=pl.BlockSpec((bt, S, E), lambda b: (b, 0, 0)),
        )
        return pl.pallas_call(
            kernel,
            out_shape=jax.ShapeDtypeStruct((B, S, E), jnp.float32),
            grid_spec=grid_spec,
            compiler_params=pltpu.CompilerParams(
                dimension_semantics=("parallel",),
                vmem_limit_bytes=vmem_limit),
        )(*args)

    try:
        return _call(True)
    except Exception:
        # pipeline_mode=pl.Buffered(1) unsupported on this jax version -> fall back to the
        # default double buffering (costs ~weight_bytes extra VMEM, semantics unchanged).
        return _call(False)


def encoder_reference(src, params, num_heads):
    """Pure-JAX fp32 reference matching the PyTorch Encoder forward."""
    B, S, E = src.shape
    H = num_heads
    hd = E // H
    x = src
    qkv = jnp.einsum('bse,fe->bsf', x, params["wqkv"]) + params["bqkv"][0]
    q, k, v = qkv[..., :E], qkv[..., E:2 * E], qkv[..., 2 * E:]

    def heads(t):
        return t.reshape(B, S, H, hd).transpose(0, 2, 1, 3)

    qh, kh, vh = heads(q), heads(k), heads(v)
    s = jnp.einsum('bhqd,bhkd->bhqk', qh, kh) / math.sqrt(hd)
    p = jax.nn.softmax(s, axis=-1)
    o = jnp.einsum('bhqk,bhkd->bhqd', p, vh).transpose(0, 2, 1, 3).reshape(B, S, E)
    attn = jnp.einsum('bse,fe->bsf', o, params["wo"]) + params["bo"][0]

    def ln(t):
        mean = t.mean(-1, keepdims=True)
        var = ((t - mean) ** 2).mean(-1, keepdims=True)
        return (t - mean) / jnp.sqrt(var + 1e-5) * params["lnw"][0] + params["lnb"][0]

    x1 = ln(attn + x)
    h1 = jax.nn.relu(jnp.einsum('bse,fe->bsf', x1, params["w1"]) + params["b1"][0])
    ff = jnp.einsum('bsf,ef->bse', h1, params["w2"]) + params["b2"][0]
    return ln(ff + x1)


def make_params(key, embed_dim, num_heads, dim_feedforward):
    E, F = embed_dim, dim_feedforward
    ks = jax.random.split(key, 8)
    scale = 0.02
    return {
        "wqkv": scale * jax.random.normal(ks[0], (3 * E, E), jnp.float32),
        "bqkv": scale * jax.random.normal(ks[1], (1, 3 * E), jnp.float32),
        "wo":   scale * jax.random.normal(ks[2], (E, E), jnp.float32),
        "bo":   scale * jax.random.normal(ks[3], (1, E), jnp.float32),
        "lnw":  jnp.ones((1, E), jnp.float32),
        "lnb":  jnp.zeros((1, E), jnp.float32),
        "w1":   scale * jax.random.normal(ks[4], (F, E), jnp.float32),
        "b1":   scale * jax.random.normal(ks[5], (1, F), jnp.float32),
        "w2":   scale * jax.random.normal(ks[6], (E, F), jnp.float32),
        "b2":   scale * jax.random.normal(ks[7], (1, E), jnp.float32),
    }


if __name__ == "__main__":
    # small shapes consistent with the module
    B, S, E, H, F = 2, 8, 32, 4, 64

    key = jax.random.PRNGKey(0)
    k_src, k_src2, k_params = jax.random.split(key, 3)
    src = jax.random.normal(k_src, (B, S, E), jnp.float32)
    params = make_params(k_params, E, H, F)
    prepped = prepare_encoder_params(params, H)     # one-time weight prep, reused below

    out = encoder_forward(src, prepped, num_heads=H)
    jax.block_until_ready(out)
    assert out.shape == (B, S, E)
    # loose tolerance: kernel uses bf16 MXU operands with fp32 accumulation
    ref = encoder_reference(src, params, num_heads=H)
    assert float(jnp.max(jnp.abs(out - ref))) < 0.1

    # second run exercises the online-softmax K/V-tiling loop (2 tiles of 8) at S=16
    src2 = jax.random.normal(k_src2, (B, 2 * S, E), jnp.float32)
    out2 = encoder_forward(src2, prepped, num_heads=H, kv_tile=S)
    jax.block_until_ready(out2)
    ref2 = encoder_reference(src2, params, num_heads=H)
    assert float(jnp.max(jnp.abs(out2 - ref2))) < 0.1

    print("KERNEL_OK")
</pallas_src>

<mosaic_0001>
module attributes {stable_mosaic.version = 11 : i64} {
  func.func @encoder_kernel(%arg0: i32, %arg1: memref<1x8x32xf32, #tpu.memory_space<vmem>>, %arg2: memref<32x32xbf16, #tpu.memory_space<vmem>>, %arg3: memref<32x32xbf16, #tpu.memory_space<vmem>>, %arg4: memref<32x32xbf16, #tpu.memory_space<vmem>>, %arg5: memref<32x32xbf16, #tpu.memory_space<vmem>>, %arg6: memref<32x64xbf16, #tpu.memory_space<vmem>>, %arg7: memref<64x32xbf16, #tpu.memory_space<vmem>>, %arg8: memref<8x32xf32, #tpu.memory_space<vmem>>, %arg9: memref<1x64xf32, #tpu.memory_space<vmem>>, %arg10: memref<1x8x32xf32, #tpu.memory_space<vmem>>) attributes {dimension_semantics = [#tpu.dimension_semantics<parallel>], iteration_bounds = array<i64: 2>, scalar_prefetch = 0 : i64, scratch_operands = 0 : i64, tpu.core_type = #tpu.core_type<tc>, window_params = [{transform_indices = @transform_0, window_bounds = array<i64: 1, 8, 32>}, {pipeline_mode = #tpu.pipeline_mode<synchronous>, transform_indices = @transform_1, window_bounds = array<i64: 32, 32>}, {pipeline_mode = #tpu.pipeline_mode<synchronous>, transform_indices = @transform_2, window_bounds = array<i64: 32, 32>}, {pipeline_mode = #tpu.pipeline_mode<synchronous>, transform_indices = @transform_3, window_bounds = array<i64: 32, 32>}, {pipeline_mode = #tpu.pipeline_mode<synchronous>, transform_indices = @transform_4, window_bounds = array<i64: 32, 32>}, {pipeline_mode = #tpu.pipeline_mode<synchronous>, transform_indices = @transform_5, window_bounds = array<i64: 32, 64>}, {pipeline_mode = #tpu.pipeline_mode<synchronous>, transform_indices = @transform_6, window_bounds = array<i64: 64, 32>}, {pipeline_mode = #tpu.pipeline_mode<synchronous>, transform_indices = @transform_7, window_bounds = array<i64: 8, 32>}, {pipeline_mode = #tpu.pipeline_mode<synchronous>, transform_indices = @transform_8, window_bounds = array<i64: 1, 64>}, {transform_indices = @transform_9, window_bounds = array<i64: 1, 8, 32>}]} {
    %c0 = arith.constant 0 : index
    %c0_0 = arith.constant 0 : index
    %0 = vector.load %arg8[%c0, %c0_0] : memref<8x32xf32, #tpu.memory_space<vmem>>, vector<8x32xf32>
    %1 = vector.extract_strided_slice %0 {offsets = [0, 0], sizes = [1, 32], strides = [1, 1]} : vector<8x32xf32> to vector<1x32xf32>
    %2 = vector.extract_strided_slice %0 {offsets = [1, 0], sizes = [1, 32], strides = [1, 1]} : vector<8x32xf32> to vector<1x32xf32>
    %3 = vector.extract_strided_slice %0 {offsets = [2, 0], sizes = [1, 32], strides = [1, 1]} : vector<8x32xf32> to vector<1x32xf32>
    %4 = vector.extract_strided_slice %0 {offsets = [3, 0], sizes = [1, 32], strides = [1, 1]} : vector<8x32xf32> to vector<1x32xf32>
    %5 = vector.extract_strided_slice %0 {offsets = [4, 0], sizes = [1, 32], strides = [1, 1]} : vector<8x32xf32> to vector<1x32xf32>
    %6 = vector.extract_strided_slice %0 {offsets = [5, 0], sizes = [1, 32], strides = [1, 1]} : vector<8x32xf32> to vector<1x32xf32>
    %7 = vector.extract_strided_slice %0 {offsets = [6, 0], sizes = [1, 32], strides = [1, 1]} : vector<8x32xf32> to vector<1x32xf32>
    %c0_1 = arith.constant 0 : index
    %c0_2 = arith.constant 0 : index
    %8 = vector.load %arg9[%c0_1, %c0_2] : memref<1x64xf32, #tpu.memory_space<vmem>>, vector<1x64xf32>
    %c0_3 = arith.constant 0 : index
    %c0_4 = arith.constant 0 : index
    %c0_5 = arith.constant 0 : index
    %9 = vector.load %arg1[%c0_3, %c0_4, %c0_5] : memref<1x8x32xf32, #tpu.memory_space<vmem>>, vector<1x8x32xf32>
    %10 = vector.shape_cast %9 : vector<1x8x32xf32> to vector<8x32xf32>
    %11 = arith.truncf %10 : vector<8x32xf32> to vector<8x32xbf16>
    %c0_6 = arith.constant 0 : index
    %c0_7 = arith.constant 0 : index
    %12 = vector.load %arg2[%c0_6, %c0_7] : memref<32x32xbf16, #tpu.memory_space<vmem>>, vector<32x32xbf16>
    %cst = arith.constant dense<0.000000e+00> : vector<8x32xf32>
    %13 = tpu.matmul %11, %12, %cst {dimension_numbers = #tpu.dot_dimension_numbers<[1], [0], [0], [1], [0, 0, 1, 1], [], []>} : vector<8x32xbf16>, vector<32x32xbf16>, vector<8x32xf32> -> vector<8x32xf32>
    %14 = vector.broadcast %1 : vector<1x32xf32> to vector<8x32xf32>
    %15 = arith.addf %13, %14 : vector<8x32xf32>
    %16 = vector.shape_cast %15 : vector<8x32xf32> to vector<1x8x4x8xf32>
    %17 = tpu.transpose %16, [0, 2, 1, 3] : vector<1x8x4x8xf32> -> vector<1x4x8x8xf32>
    %18 = vector.shape_cast %17 : vector<1x4x8x8xf32> to vector<4x8x8xf32>
    %19 = arith.truncf %18 : vector<4x8x8xf32> to vector<4x8x8xbf16>
    %cst_8 = arith.constant 0xFF800000 : f32
    %20 = vector.broadcast %cst_8 : f32 to vector<4x8x1xf32>
    %cst_9 = arith.constant 0.000000e+00 : f32
    %21 = vector.broadcast %cst_9 : f32 to vector<4x8x1xf32>
    %cst_10 = arith.constant 0.000000e+00 : f32
    %22 = vector.broadcast %cst_10 : f32 to vector<4x8x8xf32>
    %c0_11 = arith.constant 0 : index
    %c0_12 = arith.constant 0 : index
    %c0_13 = arith.constant 0 : index
    %23 = vector.load %arg1[%c0_11, %c0_12, %c0_13] : memref<1x8x32xf32, #tpu.memory_space<vmem>>, vector<1x8x32xf32>
    %24 = arith.truncf %23 : vector<1x8x32xf32> to vector<1x8x32xbf16>
    %25 = vector.shape_cast %24 : vector<1x8x32xbf16> to vector<8x32xbf16>
    %c0_14 = arith.constant 0 : index
    %c0_15 = arith.constant 0 : index
    %26 = vector.load %arg3[%c0_14, %c0_15] : memref<32x32xbf16, #tpu.memory_space<vmem>>, vector<32x32xbf16>
    %cst_16 = arith.constant dense<0.000000e+00> : vector<8x32xf32>
    %27 = tpu.matmul %25, %26, %cst_16 {dimension_numbers = #tpu.dot_dimension_numbers<[1], [0], [0], [1], [0, 0, 1, 1], [], []>} : vector<8x32xbf16>, vector<32x32xbf16>, vector<8x32xf32> -> vector<8x32xf32>
    %28 = vector.broadcast %2 : vector<1x32xf32> to vector<8x32xf32>
    %29 = arith.addf %27, %28 : vector<8x32xf32>
    %c0_17 = arith.constant 0 : index
    %c0_18 = arith.constant 0 : index
    %30 = vector.load %arg4[%c0_17, %c0_18] : memref<32x32xbf16, #tpu.memory_space<vmem>>, vector<32x32xbf16>
    %cst_19 = arith.constant dense<0.000000e+00> : vector<8x32xf32>
    %31 = tpu.matmul %25, %30, %cst_19 {dimension_numbers = #tpu.dot_dimension_numbers<[1], [0], [0], [1], [0, 0, 1, 1], [], []>} : vector<8x32xbf16>, vector<32x32xbf16>, vector<8x32xf32> -> vector<8x32xf32>
    %32 = vector.broadcast %3 : vector<1x32xf32> to vector<8x32xf32>
    %33 = arith.addf %31, %32 : vector<8x32xf32>
    %34 = vector.shape_cast %29 : vector<8x32xf32> to vector<1x8x4x8xf32>
    %35 = tpu.transpose %34, [0, 2, 1, 3] : vector<1x8x4x8xf32> -> vector<1x4x8x8xf32>
    %36 = vector.shape_cast %35 : vector<1x4x8x8xf32> to vector<4x8x8xf32>
    %37 = arith.truncf %36 : vector<4x8x8xf32> to vector<4x8x8xbf16>
    %38 = vector.shape_cast %33 : vector<8x32xf32> to vector<1x8x4x8xf32>
    %39 = tpu.transpose %38, [0, 2, 1, 3] : vector<1x8x4x8xf32> -> vector<1x4x8x8xf32>
    %40 = vector.shape_cast %39 : vector<1x4x8x8xf32> to vector<4x8x8xf32>
    %41 = arith.truncf %40 : vector<4x8x8xf32> to vector<4x8x8xbf16>
    "tpu.trace_start"() <{level = 10 : i32, message = "hqd,hkd->hqk"}> : () -> ()
    %cst_20 = arith.constant dense<0.000000e+00> : vector<4x8x8xf32>
    %42 = tpu.matmul %19, %37, %cst_20 {dimension_numbers = #tpu.dot_dimension_numbers<[2], [2], [1], [1], [0, 0, 0, 1, 1, 1], [0], [0]>} : vector<4x8x8xbf16>, vector<4x8x8xbf16>, vector<4x8x8xf32> -> vector<4x8x8xf32>
    "tpu.trace_stop"() : () -> ()
    %cst_21 = arith.constant dense<0xFF800000> : vector<4x8xf32>
    %43 = vector.multi_reduction <maximumf>, %42, %cst_21 [2] : vector<4x8x8xf32> to vector<4x8xf32>
    %44 = vector.shape_cast %43 : vector<4x8xf32> to vector<4x8x1xf32>
    %45 = arith.maximumf %20, %44 : vector<4x8x1xf32>
    %46 = arith.subf %20, %45 : vector<4x8x1xf32>
    %47 = math.exp %46 : vector<4x8x1xf32>
    %48 = vector.broadcast %45 : vector<4x8x1xf32> to vector<4x8x8xf32>
    %49 = arith.subf %42, %48 : vector<4x8x8xf32>
    %50 = math.exp %49 : vector<4x8x8xf32>
    %51 = arith.mulf %47, %21 : vector<4x8x1xf32>
    %cst_22 = arith.constant dense<0.000000e+00> : vector<4x8xf32>
    %52 = vector.multi_reduction <add>, %50, %cst_22 [2] : vector<4x8x8xf32> to vector<4x8xf32>
    %53 = vector.shape_cast %52 : vector<4x8xf32> to vector<4x8x1xf32>
    %54 = arith.addf %51, %53 : vector<4x8x1xf32>
    %55 = vector.broadcast %47 : vector<4x8x1xf32> to vector<4x8x8xf32>
    %56 = arith.mulf %55, %22 : vector<4x8x8xf32>
    %57 = arith.truncf %50 : vector<4x8x8xf32> to vector<4x8x8xbf16>
    "tpu.trace_start"() <{level = 10 : i32, message = "hqk,hkd->hqd"}> : () -> ()
    %cst_23 = arith.constant dense<0.000000e+00> : vector<4x8x8xf32>
    %58 = tpu.matmul %57, %41, %cst_23 {dimension_numbers = #tpu.dot_dimension_numbers<[2], [1], [1], [2], [0, 0, 0, 1, 1, 2], [0], [0]>} : vector<4x8x8xbf16>, vector<4x8x8xbf16>, vector<4x8x8xf32> -> vector<4x8x8xf32>
    "tpu.trace_stop"() : () -> ()
    %59 = arith.addf %56, %58 : vector<4x8x8xf32>
    %60 = tpu.reciprocal %54 : vector<4x8x1xf32> -> vector<4x8x1xf32>
    %61 = vector.broadcast %60 : vector<4x8x1xf32> to vector<4x8x8xf32>
    %62 = arith.mulf %59, %61 : vector<4x8x8xf32>
    %63 = vector.shape_cast %62 : vector<4x8x8xf32> to vector<1x4x8x8xf32>
    %64 = tpu.transpose %63, [0, 2, 1, 3] : vector<1x4x8x8xf32> -> vector<1x8x4x8xf32>
    %65 = vector.shape_cast %64 : vector<1x8x4x8xf32> to vector<8x32xf32>
    %66 = arith.truncf %65 : vector<8x32xf32> to vector<8x32xbf16>
    %c0_24 = arith.constant 0 : index
    %c0_25 = arith.constant 0 : index
    %67 = vector.load %arg5[%c0_24, %c0_25] : memref<32x32xbf16, #tpu.memory_space<vmem>>, vector<32x32xbf16>
    %cst_26 = arith.constant dense<0.000000e+00> : vector<8x32xf32>
    %68 = tpu.matmul %66, %67, %cst_26 {dimension_numbers = #tpu.dot_dimension_numbers<[1], [0], [0], [1], [0, 0, 1, 1], [], []>} : vector<8x32xbf16>, vector<32x32xbf16>, vector<8x32xf32> -> vector<8x32xf32>
    %69 = vector.broadcast %4 : vector<1x32xf32> to vector<8x32xf32>
    %70 = arith.addf %68, %69 : vector<8x32xf32>
    %71 = arith.addf %70, %10 : vector<8x32xf32>
    %cst_27 = arith.constant dense<0.000000e+00> : vector<8xf32>
    %72 = vector.multi_reduction <add>, %71, %cst_27 [1] : vector<8x32xf32> to vector<8xf32>
    %73 = vector.shape_cast %72 : vector<8xf32> to vector<8x1xf32>
    %cst_28 = arith.constant 3.200000e+01 : f32
    %74 = vector.broadcast %cst_28 : f32 to vector<8x1xf32>
    %75 = arith.divf %73, %74 : vector<8x1xf32>
    %76 = vector.broadcast %75 : vector<8x1xf32> to vector<8x32xf32>
    %77 = arith.subf %71, %76 : vector<8x32xf32>
    %78 = arith.mulf %77, %77 : vector<8x32xf32>
    %cst_29 = arith.constant dense<0.000000e+00> : vector<8xf32>
    %79 = vector.multi_reduction <add>, %78, %cst_29 [1] : vector<8x32xf32> to vector<8xf32>
    %80 = vector.shape_cast %79 : vector<8xf32> to vector<8x1xf32>
    %cst_30 = arith.constant 3.200000e+01 : f32
    %81 = vector.broadcast %cst_30 : f32 to vector<8x1xf32>
    %82 = arith.divf %80, %81 : vector<8x1xf32>
    %83 = vector.broadcast %75 : vector<8x1xf32> to vector<8x32xf32>
    %84 = arith.subf %71, %83 : vector<8x32xf32>
    %cst_31 = arith.constant 9.99999974E-6 : f32
    %85 = vector.broadcast %cst_31 : f32 to vector<8x1xf32>
    %86 = arith.addf %82, %85 : vector<8x1xf32>
    %87 = math.rsqrt %86 : vector<8x1xf32>
    %88 = vector.broadcast %87 : vector<8x1xf32> to vector<8x32xf32>
    %89 = arith.mulf %84, %88 : vector<8x32xf32>
    %90 = vector.broadcast %5 : vector<1x32xf32> to vector<8x32xf32>
    %91 = arith.mulf %89, %90 : vector<8x32xf32>
    %92 = vector.broadcast %6 : vector<1x32xf32> to vector<8x32xf32>
    %93 = arith.addf %91, %92 : vector<8x32xf32>
    %94 = arith.truncf %93 : vector<8x32xf32> to vector<8x32xbf16>
    %c0_32 = arith.constant 0 : index
    %c0_33 = arith.constant 0 : index
    %95 = vector.load %arg6[%c0_32, %c0_33] : memref<32x64xbf16, #tpu.memory_space<vmem>>, vector<32x64xbf16>
    %cst_34 = arith.constant dense<0.000000e+00> : vector<8x64xf32>
    %96 = tpu.matmul %94, %95, %cst_34 {dimension_numbers = #tpu.dot_dimension_numbers<[1], [0], [0], [1], [0, 0, 1, 1], [], []>} : vector<8x32xbf16>, vector<32x64xbf16>, vector<8x64xf32> -> vector<8x64xf32>
    %97 = vector.broadcast %8 : vector<1x64xf32> to vector<8x64xf32>
    %98 = arith.addf %96, %97 : vector<8x64xf32>
    %cst_35 = arith.constant 0.000000e+00 : f32
    %99 = vector.broadcast %cst_35 : f32 to vector<8x64xf32>
    %100 = arith.maximumf %98, %99 : vector<8x64xf32>
    %101 = arith.truncf %100 : vector<8x64xf32> to vector<8x64xbf16>
    %c0_36 = arith.constant 0 : index
    %c0_37 = arith.constant 0 : index
    %102 = vector.load %arg7[%c0_36, %c0_37] : memref<64x32xbf16, #tpu.memory_space<vmem>>, vector<64x32xbf16>
    %cst_38 = arith.constant dense<0.000000e+00> : vector<8x32xf32>
    %103 = tpu.matmul %101, %102, %cst_38 {dimension_numbers = #tpu.dot_dimension_numbers<[1], [0], [0], [1], [0, 0, 1, 1], [], []>} : vector<8x64xbf16>, vector<64x32xbf16>, vector<8x32xf32> -> vector<8x32xf32>
    %104 = vector.broadcast %7 : vector<1x32xf32> to vector<8x32xf32>
    %105 = arith.addf %103, %104 : vector<8x32xf32>
    %106 = arith.addf %105, %93 : vector<8x32xf32>
    %cst_39 = arith.constant dense<0.000000e+00> : vector<8xf32>
    %107 = vector.multi_reduction <add>, %106, %cst_39 [1] : vector<8x32xf32> to vector<8xf32>
    %108 = vector.shape_cast %107 : vector<8xf32> to vector<8x1xf32>
    %cst_40 = arith.constant 3.200000e+01 : f32
    %109 = vector.broadcast %cst_40 : f32 to vector<8x1xf32>
    %110 = arith.divf %108, %109 : vector<8x1xf32>
    %111 = vector.broadcast %110 : vector<8x1xf32> to vector<8x32xf32>
    %112 = arith.subf %106, %111 : vector<8x32xf32>
    %113 = arith.mulf %112, %112 : vector<8x32xf32>
    %cst_41 = arith.constant dense<0.000000e+00> : vector<8xf32>
    %114 = vector.multi_reduction <add>, %113, %cst_41 [1] : vector<8x32xf32> to vector<8xf32>
    %115 = vector.shape_cast %114 : vector<8xf32> to vector<8x1xf32>
    %cst_42 = arith.constant 3.200000e+01 : f32
    %116 = vector.broadcast %cst_42 : f32 to vector<8x1xf32>
    %117 = arith.divf %115, %116 : vector<8x1xf32>
    %118 = vector.broadcast %110 : vector<8x1xf32> to vector<8x32xf32>
    %119 = arith.subf %106, %118 : vector<8x32xf32>
    %cst_43 = arith.constant 9.99999974E-6 : f32
    %120 = vector.broadcast %cst_43 : f32 to vector<8x1xf32>
    %121 = arith.addf %117, %120 : vector<8x1xf32>
    %122 = math.rsqrt %121 : vector<8x1xf32>
    %123 = vector.broadcast %122 : vector<8x1xf32> to vector<8x32xf32>
    %124 = arith.mulf %119, %123 : vector<8x32xf32>
    %125 = vector.broadcast %5 : vector<1x32xf32> to vector<8x32xf32>
    %126 = arith.mulf %124, %125 : vector<8x32xf32>
    %127 = vector.broadcast %6 : vector<1x32xf32> to vector<8x32xf32>
    %128 = arith.addf %126, %127 : vector<8x32xf32>
    %129 = vector.shape_cast %128 : vector<8x32xf32> to vector<1x8x32xf32>
    %c0_44 = arith.constant 0 : index
    %c0_45 = arith.constant 0 : index
    %c0_46 = arith.constant 0 : index
    %130 = vector.load %arg10[%c0_44, %c0_45, %c0_46] : memref<1x8x32xf32, #tpu.memory_space<vmem>>, vector<1x8x32xf32>
    tpu.vector_store %arg10[%c0_44, %c0_45, %c0_46], %129 {strides = array<i32>} : memref<1x8x32xf32, #tpu.memory_space<vmem>>, vector<1x8x32xf32>,
    return
  }
  func.func @transform_0(%arg0: i32) -> (i32, i32, i32) {
    %c0_i32 = arith.constant 0 : i32
    %c0_i32_0 = arith.constant 0 : i32
    %c0_i32_1 = arith.constant 0 : i32
    return %arg0, %c0_i32, %c0_i32_0 : i32, i32, i32
  }
  func.func @transform_1(%arg0: i32) -> (i32, i32) {
    %c0_i32 = arith.constant 0 : i32
    %c0_i32_0 = arith.constant 0 : i32
    %c0_i32_1 = arith.constant 0 : i32
    return %c0_i32, %c0_i32_0 : i32, i32
  }
  func.func @transform_2(%arg0: i32) -> (i32, i32) {
    %c0_i32 = arith.constant 0 : i32
    %c0_i32_0 = arith.constant 0 : i32
    %c0_i32_1 = arith.constant 0 : i32
    return %c0_i32, %c0_i32_0 : i32, i32
  }
  func.func @transform_3(%arg0: i32) -> (i32, i32) {
    %c0_i32 = arith.constant 0 : i32
    %c0_i32_0 = arith.constant 0 : i32
    %c0_i32_1 = arith.constant 0 : i32
    return %c0_i32, %c0_i32_0 : i32, i32
  }
  func.func @transform_4(%arg0: i32) -> (i32, i32) {
    %c0_i32 = arith.constant 0 : i32
    %c0_i32_0 = arith.constant 0 : i32
    %c0_i32_1 = arith.constant 0 : i32
    return %c0_i32, %c0_i32_0 : i32, i32
  }
  func.func @transform_5(%arg0: i32) -> (i32, i32) {
    %c0_i32 = arith.constant 0 : i32
    %c0_i32_0 = arith.constant 0 : i32
    %c0_i32_1 = arith.constant 0 : i32
    return %c0_i32, %c0_i32_0 : i32, i32
  }
  func.func @transform_6(%arg0: i32) -> (i32, i32) {
    %c0_i32 = arith.constant 0 : i32
    %c0_i32_0 = arith.constant 0 : i32
    %c0_i32_1 = arith.constant 0 : i32
    return %c0_i32, %c0_i32_0 : i32, i32
  }
  func.func @transform_7(%arg0: i32) -> (i32, i32) {
    %c0_i32 = arith.constant 0 : i32
    %c0_i32_0 = arith.constant 0 : i32
    %c0_i32_1 = arith.constant 0 : i32
    return %c0_i32, %c0_i32_0 : i32, i32
  }
  func.func @transform_8(%arg0: i32) -> (i32, i32) {
    %c0_i32 = arith.constant 0 : i32
    %c0_i32_0 = arith.constant 0 : i32
    %c0_i32_1 = arith.constant 0 : i32
    return %c0_i32, %c0_i32_0 : i32, i32
  }
  func.func @transform_9(%arg0: i32) -> (i32, i32, i32) {
    %c0_i32 = arith.constant 0 : i32
    %c0_i32_0 = arith.constant 0 : i32
    %c0_i32_1 = arith.constant 0 : i32
    return %arg0, %c0_i32, %c0_i32_0 : i32, i32, i32
  }
}

module attributes {stable_mosaic.version = 11 : i64} {
  func.func @encoder_kernel(%arg0: i32, %arg1: memref<1x8x32xf32, #tpu.memory_space<vmem>>, %arg2: memref<32x32xbf16, #tpu.memory_space<vmem>>, %arg3: memref<32x32xbf16, #tpu.memory_space<vmem>>, %arg4: memref<32x32xbf16, #tpu.memory_space<vmem>>, %arg5: memref<32x32xbf16, #tpu.memory_space<vmem>>, %arg6: memref<32x64xbf16, #tpu.memory_space<vmem>>, %arg7: memref<64x32xbf16, #tpu.memory_space<vmem>>, %arg8: memref<8x32xf32, #tpu.memory_space<vmem>>, %arg9: memref<1x64xf32, #tpu.memory_space<vmem>>, %arg10: memref<1x8x32xf32, #tpu.memory_space<vmem>>) attributes {dimension_semantics = [#tpu.dimension_semantics<parallel>], iteration_bounds = array<i64: 2>, scalar_prefetch = 0 : i64, scratch_operands = 0 : i64, tpu.core_type = #tpu.core_type<tc>, window_params = [{transform_indices = @transform_0, window_bounds = array<i64: 1, 8, 32>}, {pipeline_mode = #tpu.pipeline_mode<synchronous>, transform_indices = @transform_1, window_bounds = array<i64: 32, 32>}, {pipeline_mode = #tpu.pipeline_mode<synchronous>, transform_indices = @transform_2, window_bounds = array<i64: 32, 32>}, {pipeline_mode = #tpu.pipeline_mode<synchronous>, transform_indices = @transform_3, window_bounds = array<i64: 32, 32>}, {pipeline_mode = #tpu.pipeline_mode<synchronous>, transform_indices = @transform_4, window_bounds = array<i64: 32, 32>}, {pipeline_mode = #tpu.pipeline_mode<synchronous>, transform_indices = @transform_5, window_bounds = array<i64: 32, 64>}, {pipeline_mode = #tpu.pipeline_mode<synchronous>, transform_indices = @transform_6, window_bounds = array<i64: 64, 32>}, {pipeline_mode = #tpu.pipeline_mode<synchronous>, transform_indices = @transform_7, window_bounds = array<i64: 8, 32>}, {pipeline_mode = #tpu.pipeline_mode<synchronous>, transform_indices = @transform_8, window_bounds = array<i64: 1, 64>}, {transform_indices = @transform_9, window_bounds = array<i64: 1, 8, 32>}]} {
    %c0 = arith.constant 0 : index
    %c0_0 = arith.constant 0 : index
    %0 = vector.load %arg8[%c0, %c0_0] : memref<8x32xf32, #tpu.memory_space<vmem>>, vector<8x32xf32>
    %1 = vector.extract_strided_slice %0 {offsets = [0, 0], sizes = [1, 32], strides = [1, 1]} : vector<8x32xf32> to vector<1x32xf32>
    %2 = vector.extract_strided_slice %0 {offsets = [1, 0], sizes = [1, 32], strides = [1, 1]} : vector<8x32xf32> to vector<1x32xf32>
    %3 = vector.extract_strided_slice %0 {offsets = [2, 0], sizes = [1, 32], strides = [1, 1]} : vector<8x32xf32> to vector<1x32xf32>
    %4 = vector.extract_strided_slice %0 {offsets = [3, 0], sizes = [1, 32], strides = [1, 1]} : vector<8x32xf32> to vector<1x32xf32>
    %5 = vector.extract_strided_slice %0 {offsets = [4, 0], sizes = [1, 32], strides = [1, 1]} : vector<8x32xf32> to vector<1x32xf32>
    %6 = vector.extract_strided_slice %0 {offsets = [5, 0], sizes = [1, 32], strides = [1, 1]} : vector<8x32xf32> to vector<1x32xf32>
    %7 = vector.extract_strided_slice %0 {offsets = [6, 0], sizes = [1, 32], strides = [1, 1]} : vector<8x32xf32> to vector<1x32xf32>
    %c0_1 = arith.constant 0 : index
    %c0_2 = arith.constant 0 : index
    %8 = vector.load %arg9[%c0_1, %c0_2] : memref<1x64xf32, #tpu.memory_space<vmem>>, vector<1x64xf32>
    %c0_3 = arith.constant 0 : index
    %c0_4 = arith.constant 0 : index
    %c0_5 = arith.constant 0 : index
    %9 = vector.load %arg1[%c0_3, %c0_4, %c0_5] : memref<1x8x32xf32, #tpu.memory_space<vmem>>, vector<1x8x32xf32>
    %10 = vector.shape_cast %9 : vector<1x8x32xf32> to vector<8x32xf32>
    %11 = arith.truncf %10 : vector<8x32xf32> to vector<8x32xbf16>
    %c0_6 = arith.constant 0 : index
    %c0_7 = arith.constant 0 : index
    %12 = vector.load %arg2[%c0_6, %c0_7] : memref<32x32xbf16, #tpu.memory_space<vmem>>, vector<32x32xbf16>
    %cst = arith.constant dense<0.000000e+00> : vector<8x32xf32>
    %13 = tpu.matmul %11, %12, %cst {dimension_numbers = #tpu.dot_dimension_numbers<[1], [0], [0], [1], [0, 0, 1, 1], [], []>} : vector<8x32xbf16>, vector<32x32xbf16>, vector<8x32xf32> -> vector<8x32xf32>
    %14 = vector.broadcast %1 : vector<1x32xf32> to vector<8x32xf32>
    %15 = arith.addf %13, %14 : vector<8x32xf32>
    %16 = vector.shape_cast %15 : vector<8x32xf32> to vector<1x8x4x8xf32>
    %17 = tpu.transpose %16, [0, 2, 1, 3] : vector<1x8x4x8xf32> -> vector<1x4x8x8xf32>
    %18 = vector.shape_cast %17 : vector<1x4x8x8xf32> to vector<4x8x8xf32>
    %19 = arith.truncf %18 : vector<4x8x8xf32> to vector<4x8x8xbf16>
    %cst_8 = arith.constant 0xFF800000 : f32
    %20 = vector.broadcast %cst_8 : f32 to vector<4x8x1xf32>
    %cst_9 = arith.constant 0.000000e+00 : f32
    %21 = vector.broadcast %cst_9 : f32 to vector<4x8x1xf32>
    %cst_10 = arith.constant 0.000000e+00 : f32
    %22 = vector.broadcast %cst_10 : f32 to vector<4x8x8xf32>
    %c0_11 = arith.constant 0 : index
    %c0_12 = arith.constant 0 : index
    %c0_13 = arith.constant 0 : index
    %23 = vector.load %arg1[%c0_11, %c0_12, %c0_13] : memref<1x8x32xf32, #tpu.memory_space<vmem>>, vector<1x8x32xf32>
    %24 = arith.truncf %23 : vector<1x8x32xf32> to vector<1x8x32xbf16>
    %25 = vector.shape_cast %24 : vector<1x8x32xbf16> to vector<8x32xbf16>
    %c0_14 = arith.constant 0 : index
    %c0_15 = arith.constant 0 : index
    %26 = vector.load %arg3[%c0_14, %c0_15] : memref<32x32xbf16, #tpu.memory_space<vmem>>, vector<32x32xbf16>
    %cst_16 = arith.constant dense<0.000000e+00> : vector<8x32xf32>
    %27 = tpu.matmul %25, %26, %cst_16 {dimension_numbers = #tpu.dot_dimension_numbers<[1], [0], [0], [1], [0, 0, 1, 1], [], []>} : vector<8x32xbf16>, vector<32x32xbf16>, vector<8x32xf32> -> vector<8x32xf32>
    %28 = vector.broadcast %2 : vector<1x32xf32> to vector<8x32xf32>
    %29 = arith.addf %27, %28 : vector<8x32xf32>
    %c0_17 = arith.constant 0 : index
    %c0_18 = arith.constant 0 : index
    %30 = vector.load %arg4[%c0_17, %c0_18] : memref<32x32xbf16, #tpu.memory_space<vmem>>, vector<32x32xbf16>
    %cst_19 = arith.constant dense<0.000000e+00> : vector<8x32xf32>
    %31 = tpu.matmul %25, %30, %cst_19 {dimension_numbers = #tpu.dot_dimension_numbers<[1], [0], [0], [1], [0, 0, 1, 1], [], []>} : vector<8x32xbf16>, vector<32x32xbf16>, vector<8x32xf32> -> vector<8x32xf32>
    %32 = vector.broadcast %3 : vector<1x32xf32> to vector<8x32xf32>
    %33 = arith.addf %31, %32 : vector<8x32xf32>
    %34 = vector.shape_cast %29 : vector<8x32xf32> to vector<1x8x4x8xf32>
    %35 = tpu.transpose %34, [0, 2, 1, 3] : vector<1x8x4x8xf32> -> vector<1x4x8x8xf32>
    %36 = vector.shape_cast %35 : vector<1x4x8x8xf32> to vector<4x8x8xf32>
    %37 = arith.truncf %36 : vector<4x8x8xf32> to vector<4x8x8xbf16>
    %38 = vector.shape_cast %33 : vector<8x32xf32> to vector<1x8x4x8xf32>
    %39 = tpu.transpose %38, [0, 2, 1, 3] : vector<1x8x4x8xf32> -> vector<1x4x8x8xf32>
    %40 = vector.shape_cast %39 : vector<1x4x8x8xf32> to vector<4x8x8xf32>
    %41 = arith.truncf %40 : vector<4x8x8xf32> to vector<4x8x8xbf16>
    "tpu.trace_start"() <{level = 10 : i32, message = "hqd,hkd->hqk"}> : () -> ()
    %cst_20 = arith.constant dense<0.000000e+00> : vector<4x8x8xf32>
    %42 = tpu.matmul %19, %37, %cst_20 {dimension_numbers = #tpu.dot_dimension_numbers<[2], [2], [1], [1], [0, 0, 0, 1, 1, 1], [0], [0]>} : vector<4x8x8xbf16>, vector<4x8x8xbf16>, vector<4x8x8xf32> -> vector<4x8x8xf32>
    "tpu.trace_stop"() : () -> ()
    %cst_21 = arith.constant dense<0xFF800000> : vector<4x8xf32>
    %43 = vector.multi_reduction <maximumf>, %42, %cst_21 [2] : vector<4x8x8xf32> to vector<4x8xf32>
    %44 = vector.shape_cast %43 : vector<4x8xf32> to vector<4x8x1xf32>
    %45 = arith.maximumf %20, %44 : vector<4x8x1xf32>
    %46 = arith.subf %20, %45 : vector<4x8x1xf32>
    %47 = math.exp %46 : vector<4x8x1xf32>
    %48 = vector.broadcast %45 : vector<4x8x1xf32> to vector<4x8x8xf32>
    %49 = arith.subf %42, %48 : vector<4x8x8xf32>
    %50 = math.exp %49 : vector<4x8x8xf32>
    %51 = arith.mulf %47, %21 : vector<4x8x1xf32>
    %cst_22 = arith.constant dense<0.000000e+00> : vector<4x8xf32>
    %52 = vector.multi_reduction <add>, %50, %cst_22 [2] : vector<4x8x8xf32> to vector<4x8xf32>
    %53 = vector.shape_cast %52 : vector<4x8xf32> to vector<4x8x1xf32>
    %54 = arith.addf %51, %53 : vector<4x8x1xf32>
    %55 = vector.broadcast %47 : vector<4x8x1xf32> to vector<4x8x8xf32>
    %56 = arith.mulf %55, %22 : vector<4x8x8xf32>
    %57 = arith.truncf %50 : vector<4x8x8xf32> to vector<4x8x8xbf16>
    "tpu.trace_start"() <{level = 10 : i32, message = "hqk,hkd->hqd"}> : () -> ()
    %cst_23 = arith.constant dense<0.000000e+00> : vector<4x8x8xf32>
    %58 = tpu.matmul %57, %41, %cst_23 {dimension_numbers = #tpu.dot_dimension_numbers<[2], [1], [1], [2], [0, 0, 0, 1, 1, 2], [0], [0]>} : vector<4x8x8xbf16>, vector<4x8x8xbf16>, vector<4x8x8xf32> -> vector<4x8x8xf32>
    "tpu.trace_stop"() : () -> ()
    %59 = arith.addf %56, %58 : vector<4x8x8xf32>
    %60 = tpu.reciprocal %54 : vector<4x8x1xf32> -> vector<4x8x1xf32>
    %61 = vector.broadcast %60 : vector<4x8x1xf32> to vector<4x8x8xf32>
    %62 = arith.mulf %59, %61 : vector<4x8x8xf32>
    %63 = vector.shape_cast %62 : vector<4x8x8xf32> to vector<1x4x8x8xf32>
    %64 = tpu.transpose %63, [0, 2, 1, 3] : vector<1x4x8x8xf32> -> vector<1x8x4x8xf32>
    %65 = vector.shape_cast %64 : vector<1x8x4x8xf32> to vector<8x32xf32>
    %66 = arith.truncf %65 : vector<8x32xf32> to vector<8x32xbf16>
    %c0_24 = arith.constant 0 : index
    %c0_25 = arith.constant 0 : index
    %67 = vector.load %arg5[%c0_24, %c0_25] : memref<32x32xbf16, #tpu.memory_space<vmem>>, vector<32x32xbf16>
    %cst_26 = arith.constant dense<0.000000e+00> : vector<8x32xf32>
    %68 = tpu.matmul %66, %67, %cst_26 {dimension_numbers = #tpu.dot_dimension_numbers<[1], [0], [0], [1], [0, 0, 1, 1], [], []>} : vector<8x32xbf16>, vector<32x32xbf16>, vector<8x32xf32> -> vector<8x32xf32>
    %69 = vector.broadcast %4 : vector<1x32xf32> to vector<8x32xf32>
    %70 = arith.addf %68, %69 : vector<8x32xf32>
    %71 = arith.addf %70, %10 : vector<8x32xf32>
    %cst_27 = arith.constant dense<0.000000e+00> : vector<8xf32>
    %72 = vector.multi_reduction <add>, %71, %cst_27 [1] : vector<8x32xf32> to vector<8xf32>
    %73 = vector.shape_cast %72 : vector<8xf32> to vector<8x1xf32>
    %cst_28 = arith.constant 3.200000e+01 : f32
    %74 = vector.broadcast %cst_28 : f32 to vector<8x1xf32>
    %75 = arith.divf %73, %74 : vector<8x1xf32>
    %76 = vector.broadcast %75 : vector<8x1xf32> to vector<8x32xf32>
    %77 = arith.subf %71, %76 : vector<8x32xf32>
    %78 = arith.mulf %77, %77 : vector<8x32xf32>
    %cst_29 = arith.constant dense<0.000000e+00> : vector<8xf32>
    %79 = vector.multi_reduction <add>, %78, %cst_29 [1] : vector<8x32xf32> to vector<8xf32>
    %80 = vector.shape_cast %79 : vector<8xf32> to vector<8x1xf32>
    %cst_30 = arith.constant 3.200000e+01 : f32
    %81 = vector.broadcast %cst_30 : f32 to vector<8x1xf32>
    %82 = arith.divf %80, %81 : vector<8x1xf32>
    %83 = vector.broadcast %75 : vector<8x1xf32> to vector<8x32xf32>
    %84 = arith.subf %71, %83 : vector<8x32xf32>
    %cst_31 = arith.constant 9.99999974E-6 : f32
    %85 = vector.broadcast %cst_31 : f32 to vector<8x1xf32>
    %86 = arith.addf %82, %85 : vector<8x1xf32>
    %87 = math.rsqrt %86 : vector<8x1xf32>
    %88 = vector.broadcast %87 : vector<8x1xf32> to vector<8x32xf32>
    %89 = arith.mulf %84, %88 : vector<8x32xf32>
    %90 = vector.broadcast %5 : vector<1x32xf32> to vector<8x32xf32>
    %91 = arith.mulf %89, %90 : vector<8x32xf32>
    %92 = vector.broadcast %6 : vector<1x32xf32> to vector<8x32xf32>
    %93 = arith.addf %91, %92 : vector<8x32xf32>
    %94 = arith.truncf %93 : vector<8x32xf32> to vector<8x32xbf16>
    %c0_32 = arith.constant 0 : index
    %c0_33 = arith.constant 0 : index
    %95 = vector.load %arg6[%c0_32, %c0_33] : memref<32x64xbf16, #tpu.memory_space<vmem>>, vector<32x64xbf16>
    %cst_34 = arith.constant dense<0.000000e+00> : vector<8x64xf32>
    %96 = tpu.matmul %94, %95, %cst_34 {dimension_numbers = #tpu.dot_dimension_numbers<[1], [0], [0], [1], [0, 0, 1, 1], [], []>} : vector<8x32xbf16>, vector<32x64xbf16>, vector<8x64xf32> -> vector<8x64xf32>
    %97 = vector.broadcast %8 : vector<1x64xf32> to vector<8x64xf32>
    %98 = arith.addf %96, %97 : vector<8x64xf32>
    %cst_35 = arith.constant 0.000000e+00 : f32
    %99 = vector.broadcast %cst_35 : f32 to vector<8x64xf32>
    %100 = arith.maximumf %98, %99 : vector<8x64xf32>
    %101 = arith.truncf %100 : vector<8x64xf32> to vector<8x64xbf16>
    %c0_36 = arith.constant 0 : index
    %c0_37 = arith.constant 0 : index
    %102 = vector.load %arg7[%c0_36, %c0_37] : memref<64x32xbf16, #tpu.memory_space<vmem>>, vector<64x32xbf16>
    %cst_38 = arith.constant dense<0.000000e+00> : vector<8x32xf32>
    %103 = tpu.matmul %101, %102, %cst_38 {dimension_numbers = #tpu.dot_dimension_numbers<[1], [0], [0], [1], [0, 0, 1, 1], [], []>} : vector<8x64xbf16>, vector<64x32xbf16>, vector<8x32xf32> -> vector<8x32xf32>
    %104 = vector.broadcast %7 : vector<1x32xf32> to vector<8x32xf32>
    %105 = arith.addf %103, %104 : vector<8x32xf32>
    %106 = arith.addf %105, %93 : vector<8x32xf32>
    %cst_39 = arith.constant dense<0.000000e+00> : vector<8xf32>
    %107 = vector.multi_reduction <add>, %106, %cst_39 [1] : vector<8x32xf32> to vector<8xf32>
    %108 = vector.shape_cast %107 : vector<8xf32> to vector<8x1xf32>
    %cst_40 = arith.constant 3.200000e+01 : f32
    %109 = vector.broadcast %cst_40 : f32 to vector<8x1xf32>
    %110 = arith.divf %108, %109 : vector<8x1xf32>
    %111 = vector.broadcast %110 : vector<8x1xf32> to vector<8x32xf32>
    %112 = arith.subf %106, %111 : vector<8x32xf32>
    %113 = arith.mulf %112, %112 : vector<8x32xf32>
    %cst_41 = arith.constant dense<0.000000e+00> : vector<8xf32>
    %114 = vector.multi_reduction <add>, %113, %cst_41 [1] : vector<8x32xf32> to vector<8xf32>
    %115 = vector.shape_cast %114 : vector<8xf32> to vector<8x1xf32>
    %cst_42 = arith.constant 3.200000e+01 : f32
    %116 = vector.broadcast %cst_42 : f32 to vector<8x1xf32>
    %117 = arith.divf %115, %116 : vector<8x1xf32>
    %118 = vector.broadcast %110 : vector<8x1xf32> to vector<8x32xf32>
    %119 = arith.subf %106, %118 : vector<8x32xf32>
    %cst_43 = arith.constant 9.99999974E-6 : f32
    %120 = vector.broadcast %cst_43 : f32 to vector<8x1xf32>
    %121 = arith.addf %117, %120 : vector<8x1xf32>
    %122 = math.rsqrt %121 : vector<8x1xf32>
    %123 = vector.broadcast %122 : vector<8x1xf32> to vector<8x32xf32>
    %124 = arith.mulf %119, %123 : vector<8x32xf32>
    %125 = vector.broadcast %5 : vector<1x32xf32> to vector<8x32xf32>
    %126 = arith.mulf %124, %125 : vector<8x32xf32>
    %127 = vector.broadcast %6 : vector<1x32xf32> to vector<8x32xf32>
    %128 = arith.addf %126, %127 : vector<8x32xf32>
    %129 = vector.shape_cast %128 : vector<8x32xf32> to vector<1x8x32xf32>
    %c0_44 = arith.constant 0 : index
    %c0_45 = arith.constant 0 : index
    %c0_46 = arith.constant 0 : index
    %130 = vector.load %arg10[%c0_44, %c0_45, %c0_46] : memref<1x8x32xf32, #tpu.memory_space<vmem>>, vector<1x8x32xf32>
    tpu.vector_store %arg10[%c0_44, %c0_45, %c0_46], %129 {strides = array<i32>} : memref<1x8x32xf32, #tpu.memory_space<vmem>>, vector<1x8x32xf32>,
    return
  }
  func.func @transform_0(%arg0: i32) -> (i32, i32, i32) {
    %c0_i32 = arith.constant 0 : i32
    %c0_i32_0 = arith.constant 0 : i32
    %c0_i32_1 = arith.constant 0 : i32
    return %arg0, %c0_i32, %c0_i32_0 : i32, i32, i32
  }
  func.func @transform_1(%arg0: i32) -> (i32, i32) {
    %c0_i32 = arith.constant 0 : i32
    %c0_i32_0 = arith.constant 0 : i32
    %c0_i32_1 = arith.constant 0 : i32
    return %c0_i32, %c0_i32_0 : i32, i32
  }
  func.func @transform_2(%arg0: i32) -> (i32, i32) {
    %c0_i32 = arith.constant 0 : i32
    %c0_i32_0 = arith.constant 0 : i32
    %c0_i32_1 = arith.constant 0 : i32
    return %c0_i32, %c0_i32_0 : i32, i32
  }
  func.func @transform_3(%arg0: i32) -> (i32, i32) {
    %c0_i32 = arith.constant 0 : i32
    %c0_i32_0 = arith.constant 0 : i32
    %c0_i32_1 = arith.constant 0 : i32
    return %c0_i32, %c0_i32_0 : i32, i32
  }
  func.func @transform_4(%arg0: i32) -> (i32, i32) {
    %c0_i32 = arith.constant 0 : i32
    %c0_i32_0 = arith.constant 0 : i32
    %c0_i32_1 = arith.constant 0 : i32
    return %c0_i32, %c0_i32_0 : i32, i32
  }
  func.func @transform_5(%arg0: i32) -> (i32, i32) {
    %c0_i32 = arith.constant 0 : i32
    %c0_i32_0 = arith.constant 0 : i32
    %c0_i32_1 = arith.constant 0 : i32
    return %c0_i32, %c0_i32_0 : i32, i32
  }
  func.func @transform_6(%arg0: i32) -> (i32, i32) {
    %c0_i32 = arith.constant 0 : i32
    %c0_i32_0 = arith.constant 0 : i32
    %c0_i32_1 = arith.constant 0 : i32
    return %c0_i32, %c0_i32_0 : i32, i32
  }
  func.func @transform_7(%arg0: i32) -> (i32, i32) {
    %c0_i32 = arith.constant 0 : i32
    %c0_i32_0 = arith.constant 0 : i32
    %c0_i32_1 = arith.constant 0 : i32
    return %c0_i32, %c0_i32_0 : i32, i32
  }
  func.func @transform_8(%arg0: i32) -> (i32, i32) {
    %c0_i32 = arith.constant 0 : i32
    %c0_i32_0 = arith.constant 0 : i32
    %c0_i32_1 = arith.constant 0 : i32
    return %c0_i32, %c0_i32_0 : i32, i32
  }
  func.func @transform_9(%arg0: i32) -> (i32, i32, i32) {
    %c0_i32 = arith.constant 0 : i32
    %c0_i32_0 = arith.constant 0 : i32
    %c0_i32_1 = arith.constant 0 : i32
    return %arg0, %c0_i32, %c0_i32_0 : i32, i32, i32
  }
}

</mosaic_0001>

<bundles_post_ra>
// kernel: tpu_custom_call.1
= control target key start
LH: loop header
LB: loop body
LE: loop exit
PB: predicated region body
PF: predicated region fallthrough
CT: control target
= control target key end

     0   :  { %14 = vsyncpa [#allocation3], 0  ;;  %s2864_s0 = inlined_call_operand.vmem [shape: f32[2,8,32], index: 0, kind: input, shape index: {}]   ;;  %s2865_s1 = inlined_call_operand.vmem [shape: bf16[32,32], index: 1, kind: input, shape index: {}]   ;;  %s2866_s2 = inlined_call_operand.vmem [shape: bf16[32,32], index: 2, kind: input, shape index: {}]   ;;  %s2867_s3 = inlined_call_operand.hbm [shape: bf16[32,32], index: 3, kind: input, shape index: {}]   ;;  %s2868_s4 = inlined_call_operand.hbm [shape: bf16[32,32], index: 4, kind: input, shape index: {}]   ;;  %s2869_s5 = inlined_call_operand.hbm [shape: bf16[32,64], index: 5, kind: input, shape index: {}]   ;;  %s2870_s6 = inlined_call_operand.vmem [shape: bf16[64,32], index: 6, kind: input, shape index: {}]   ;;  %s2871_s7 = inlined_call_operand.vmem [shape: f32[8,32], index: 7, kind: input, shape index: {}]   ;;  %s2872_s8 = inlined_call_operand.vmem [shape: f32[1,64], index: 8, kind: input, shape index: {}]   ;;  %s2873_s9 = inlined_call_operand.hbm [shape: f32[2,8,32], index: 9, kind: output, shape index: {}]  }
   0x1   :  { %15 = vsyncpa [#allocation6], 0 }
   0x2   :  { %16 = vsyncpa [#allocation4], 0 }
   0x3   :  { %18 = vsyncpa [#allocation4 + $0x1], 0  ;;  %s2491_s30 = smov 0   ;;  %s2493_s10 = smov 0  }
   0x4   :  { %s2495_s11 = smov 0   ;;  %s2497_s12 = smov 0  }
   0x5 LB: > { %s2512_s13 = sadd.s32 4294967295, %s2423_s12   ;;  %s1964_s14 = sadd.s32 4294967294, %s2423_s12   ;;  %s2423_s12 = sphi %s2497_s12, %s2889_s12   ;;  %s2419_s11 = sphi %s2495_s11, %s2888_s11   ;;  %s2415_s10 = sphi %s2493_s10, %s2887_s10   ;;  %s2411_s30 = sphi %s2491_s30, %s2886_s30  }
   0x6   : > { %s2516_s15 = sadd.s32 1, %s2423_s12   ;;  %s225_s16 = sadd.s32 1, %s2419_s11 }
   0x7   : > { %s222_s17 = ssub.s32 %s2423_s12, %s2516_s15  ;;  %p235_p0 = scmp.ne.s32.totalorder %s2419_s11, %s2415_s10 }
   0x8   : > { %p223_p1 = scmp.eq.s32.totalorder %s222_s17, 0  ;;  %p236_p2 = scmp.eq.s32.totalorder %s2512_s13, 1 }
   0x9   : > { %p241_p3 = scmp.ne.s32.totalorder %s2415_s10, %s2411_s30  ;;  %p242_p4 = scmp.eq.s32.totalorder %s1964_s14, 1 }
   0xa   : > { %s2527_s18 = scalar_select %p223_p1, %s2419_s11, %s225_s16  }
   0xb   : > { %p2529_p5 = por %p236_p2, %p235_p0  ;;  %p2533_p6 = por %p242_p4, %p241_p3 }
   0xc   : > { %p1965_p7 = scmp.ge.s32.totalorder %s2423_s12, 1  ;;  %p249_p8 = scmp.lt.s32.totalorder %s2423_s12, 3 }
   0xd   : > { %s2876_s19 = scalar_select %p2529_p5, 1, 0 }
   0xe   : > { %s2877_s20 = scalar_select %p2533_p6, 1, 0 }
   0xf   : > { %p2874_p9 = scmp.eq.s32.totalorder %s2512_s13, 0  ;;  %p2540_p10 = pnand %p1965_p7, %p249_p8 }
  0x10   : > { %s2425_s22 = smov [#allocation5]   ;;  %s2426_s25 = smov [#allocation2]  }
  0x11   : > { %p2167_p11 = pneg %p2540_p10  ;;  %s280_s23 = sshll.u32 %s2425_s22, 4  ;;  %s281_s23 = int_to_ptr.vmem [resolvable:$true] %s280_s23 }
  0x12   : > { %s267_s26 = sshll.u32 %s2426_s25, 4  ;;  %s2427_s27 = smov [#allocation7]   ;;  %s268_s26 = int_to_ptr.vmem [resolvable:$true] %s267_s26 }
  0x13   : > { %p2548_p12 = pnand %p2874_p9, %p2167_p11  ;;  %s293_s28 = sshll.u32 %s2427_s27, 4  ;;  %s294_s28 = int_to_ptr.vmem [resolvable:$true] %s293_s28 }
  0x14   : > { %s2288_s29 = scalar_lea.vmem %s281_s23, 256  ;;  %p2296_p3 = scmp.lt.s32.totalorder %s281_s23, %s281_s23 }
  0x15   : > { %p2279_p13 = pneg %p2548_p12  ;;  %p2289_p0 = scmp.ne.s32.totalorder %s281_s23, %s2288_s29 }
  0x16   : > { %p2297_p4 = scmp.lt.s32.totalorder %s2288_s29, %s2288_s29 }
  0x17   : > { %p2291_p1 = pnand %p2289_p0, %p2279_p13 }
  0x18   : > { %p2298_p7 = por %p2297_p4, %p2296_p3 }
  0x19   : > { %p2292_p2 = pneg %p2291_p1 }
  0x1b   : > { %p2299_p8 = pnand %p2298_p7, %p2292_p2 }
  0x1d   : > { %2302 = shalt.err (!%p2299_p8)
}
  0x1e   : > { %s2428_s14 = smov 64   ;;  %s2429_s16 = smov 4  }
  0x1f   : > { %2173 = dma.hbm_to_vmem [thread:$0]  (!%p2548_p12), %s2868_s4, 256, %s281_s23, [#allocation6], %s2428_s14, %s2428_s14, %s2429_s16  }
  0x20   : > { %s2314_s25 = scalar_lea.vmem %s268_s26, 256  ;;  %p2322_p9 = scmp.lt.s32.totalorder %s268_s26, %s268_s26 }
  0x21   : > { %p2315_p11 = scmp.ne.s32.totalorder %s268_s26, %s2314_s25  ;;  %p2323_p6 = scmp.lt.s32.totalorder %s2314_s25, %s2314_s25 }
  0x23   : > { %p2317_p0 = pnand %p2315_p11, %p2279_p13  ;;  %p2324_p3 = por %p2323_p6, %p2322_p9 }
  0x25   : > { %p2318_p1 = pneg %p2317_p0 }
  0x27   : > { %p2325_p2 = pnand %p2324_p3, %p2318_p1 }
  0x29   : > { %2328 = shalt.err (!%p2325_p2)
}
  0x2a   : > { %2170 = dma.hbm_to_vmem [thread:$0]  (!%p2548_p12), %s2867_s3, 256, %s268_s26, [#allocation3], %s2428_s14, %s2428_s14, %s2429_s16  }
  0x2b   : > { %s2340_s23 = scalar_lea.vmem %s294_s28, 256  ;;  %p2348_p11 = scmp.lt.s32.totalorder %s294_s28, %s294_s28 }
  0x2c   : > { %p2341_p4 = scmp.ne.s32.totalorder %s294_s28, %s2340_s23  ;;  %p2349_p0 = scmp.lt.s32.totalorder %s2340_s23, %s2340_s23 }
  0x2e   : > { %p2343_p7 = pnand %p2341_p4, %p2279_p13  ;;  %p2350_p5 = por %p2349_p0, %p2348_p11 }
  0x30   : > { %p2344_p8 = pneg %p2343_p7 }
  0x32   : > { %p2351_p6 = pnand %p2350_p5, %p2344_p8 }
  0x34   : > { %2354 = shalt.err (!%p2351_p6)
}
  0x35   : > { %2176 = dma.hbm_to_vmem [thread:$0]  (!%p2548_p12), %s2869_s5, 256, %s294_s28, [#allocation6], %s2428_s14, %s2428_s14, %s2429_s16  }
  0x36   : > { %325 = sbr.rel (%p2540_p10) target bundleno = 2382 (0x94e), region = 56  ;;  %p2880_p9 = scmp.eq.s32.totalorder (!%p2540_p10), %s2512_s13, 0 }
  0x3b   : > { %2398 = dma.done.wait (%p2880_p9), [#allocation3], 256   ;;  %p2881_p13 = pmov %p2880_p9 }
  0x3c   : > { %p2882_p1 = pmov %p2880_p9 }
  0x3d   : > { %2400 = vsyncadd (%p2881_p13), [#allocation3], 4294967040 }
  0x3e   : > { %2402 = dma.done.wait (%p2882_p1), [#allocation6], 512   ;;  %p2883_p5 = pmov %p2882_p1 }
  0x3f   : > { %p368_p3 = scmp.lt.s32.totalorder %s2512_s13, 1  ;;  %v2430_v0 = vmov 0.0   ;;  %vm2431_vm0 = vmmov 0   ;;  %v2235_v1 = vld [vmem:[%s2866_s2 + $0x8] sm:$0xff]   ;;  %v2237_v3 = vld [vmem:[%s2866_s2] sm:$0xff]   ;;  %vm397_vm1 = vcmask 261120   ;;  %v381_v9 = vlaneseq }
  0x40   : > { %2404 = vsyncadd (%p2883_p5), [#allocation6], 4294966784  ;;  %2061 = vmatprep.subr.bf16.mxu1 %v2430_v0  ;;  %2053 = vmatprep.subr.bf16.mxu0 %v2430_v0  ;;  %v2236_v2 = vld [vmem:[%s2865_s1 + $0x8] sm:$0xff]   ;;  %v2238_v4 = vld [vmem:[%s2865_s1] sm:$0xff]   ;;  %s2432_s28 = smov 104   ;;  %s2433_s14 = smov 120  }
  0x41   : > { %2065 = vmatprep.mubr.msk.bf16.mxu1 %vm2431_vm0, %v2430_v0  ;;  %s369_s21 = scalar_select %p368_p3, %s2512_s13, 1  ;;  %2057 = vmatprep.mubr.msk.bf16.mxu0 %vm2431_vm0, %v2430_v0  ;;  %v2239_v7 = vld [vmem:[#allocation2 + $0x8] sm:$0xff]   ;;  %v2240_v8 = vld [vmem:[#allocation2] sm:$0xff]   ;;  %v2630_v10 = vshrl.u32 %v381_v9, 7  ;;  %v2435_v33 = vmov 1983009808  }
  0x42   : > { %2062 = vmatpush3.bf16.msra.mxu1 %v2235_v1  ;;  %2054 = vmatpush3.bf16.msra.mxu0 %v2236_v2  ;;  %v2636_v12 = vld [vmem:[%s2871_s7] sm:$0xff]  ;;  %s2434_s16 = smov 112   ;;  %v454_v34 = vunpack.c.l.s4 %v2435_v33  ;;  %v2436_v35 = vmov 1934713408   ;;  %vm1011_vm2 = vcmask 64512   ;;  %vm1259_vm3 = vcmask 1043456  }
  0x43   : > { %s1975_s24 = sshll.u32 %s369_s21, 3  ;;  %2063 = vmatprep.subr.bf16.mxu1 %v2430_v0  ;;  %2055 = vmatprep.subr.bf16.mxu0 %v2430_v0  ;;  %v597_v11 = vsub.s32 1, %v2630_v10  ;;  %v383_v13 = vsub.s32 0, %v2630_v10  ;;  %v657_v26 = vsub.s32 2, %v2630_v10  ;;  %v486_v36 = vunpack.c.l.s4 %v2436_v35  ;;  %s2437_s25 = smov 16  }
  0x44   : > { %s371_s29 = scalar_lea.vmem %s2864_s0, %s1975_s24  ;;  %v455_v37 = vunpack.c.0.s8 %v454_v34  ;;  %s2438_s27 = smov 8   ;;  %vm1602_vm4 = vcmask 130048   ;;  %vm1604_vm5 = vcmask 195584   ;;  %vm1799_vm6 = vcmask 523264  }
  0x45   : > { %v2613_v5 = vld [vmem:[%s371_s29] sm:$0xff]  ;;  %v598_v14 = vrot.slane %v2636_v12, %v597_v11  ;;  %v384_v15 = vrot.slane %v2636_v12, %v383_v13  ;;  %v658_v27 = vrot.slane %v2636_v12, %v657_v26  ;;  %v487_v40 = vunpack.c.0.s8 %v486_v36  ;;  %s2439_s29 = smov 24   ;;  %s2014_s23 = sshll.u32 %s2512_s13, 7 }
  0x46   : > { %v376_v6 = vpack.c.bf16 %v2613_v5, %v2613_v5  ;;  %2064 = vmatpush3.bf16.msra.mxu1 %v2237_v3  ;;  %2056 = vmatpush3.bf16.msra.mxu0 %v2238_v4  ;;  %v2651_v41 = vsub.s32 %v455_v37, %v2630_v10  ;;  %s1872_s26 = scalar_lea.hbm %s2873_s9, %s2014_s23  ;;  %p2884_p12 = scmp.ne.s32.totalorder %s2876_s19, 0 }
  0x47   : > { %2077 = vmatprep.subr.bf16.mxu1 %v2430_v0  ;;  %2069 = vmatprep.subr.bf16.mxu0 %v2430_v0  ;;  %v2654_v48 = vsub.s32 %v487_v40, %v2630_v10 }
  0x49   : > { %2066 = vmatmul.mubr.msk.bf16.vlgmr.msra.gmra.mxu1 %vm397_vm1, %v376_v6  ;;  %2058 = vmatmul.mubr.msk.bf16.vlgmr.msra.gmra.mxu0 %vm397_vm1, %v376_v6 }
  0x4a   : > { %2079 = vmatprep.mubr.msk.bf16.mxu1 %vm2431_vm0, %v2430_v0  ;;  %2073 = vmatprep.mubr.msk.bf16.mxu0 %vm2431_vm0, %v2430_v0 }
  0x4b   : > { %2070 = vmatpush3.bf16.msra.mxu0 %v2239_v7 }
  0x4c   : > { %2071 = vmatprep.subr.bf16.mxu0 %v2430_v0 }
  0x4f   : > { %2072 = vmatpush3.bf16.msra.mxu0 %v2240_v8 }
  0x50   : > { %2083 = vmatprep.subr.bf16.mxu0 %v2430_v0 }
  0x52   : > { %2074 = vmatmul.mubr.msk.bf16.vlgmr.msra.gmra.mxu0 %vm397_vm1, %v376_v6 }
  0x53   : > { %2085 = vmatprep.mubr.msk.bf16.mxu0 %vm2431_vm0, %v2430_v0 }
 0x109   : > { %v645_v16 = vpop.f32.mrf.mxu1  ;;  %v435_v18 = vpop.f32.mrf.mxu0 }
 0x10a   : > { %v646_v17 = vadd.f32 %v645_v16, %v598_v14  ;;  %v436_v20 = vadd.f32 %v435_v18, %v384_v15 }
 0x10b   : > { %v2067_v19 = vpop.f32.mrf.mxu1  ;;  %v2059_v21 = vpop.f32.mrf.mxu0 }
 0x10c   : > { %718 = vrot.lane.b32.xlu1 %v646_v17, %s2432_s28  ;;  %712 = vrot.lane.b32.xlu0 %v646_v17, %s2433_s14 }
 0x10d   : > { %v648_v22 = vpop.f32.mrf.mxu1  ;;  %v438_v23 = vpop.f32.mrf.mxu0 }
 0x10f   : > { %v2068_v24 = vpop.f32.mrf.mxu1  ;;  %v2060_v25 = vpop.f32.mrf.mxu0 }
 0x110   : > { %715 = vrot.lane.b32.xlu0 %v646_v17, %s2434_s16  ;;  %442 = vrot.lane.b32.xlu1 %v436_v20, %s2433_s14 }
 0x112   : > { %v705_v28 = vpop.f32.mrf.mxu0 }
 0x113   : > { %v2647_v29 = vadd.f32 %v705_v28, %v658_v27 }
 0x114   : > { %445 = vrot.lane.b32.xlu0 %v436_v20, %s2434_s16  ;;  %448 = vrot.lane.b32.xlu1 %v436_v20, %s2432_s28  ;;  %v2075_v30 = vpop.f32.mrf.mxu0 }
 0x116   : > { %v708_v31 = vpop.f32.mrf.mxu0 }
 0x118   : > { %862 = vrot.lane.b32.xlu0 %v2647_v29, %s2433_s14  ;;  %v2076_v32 = vpop.f32.mrf.mxu0 }
 0x17e   : > { %v719_v38 = vpop.permute.xlu1 %718  ;;  %v713_v39 = vpop.permute.xlu0 %712 }
 0x17f   : > { %v737_v42 = vcombine.low %v713_v39, %v719_v38  ;;  %v738_v43 = vcombine.high %v713_v39, %v719_v38 }
 0x181   : > { %v745_v49 = vrot.slane %v737_v42, %v2651_v41  ;;  %v752_v50 = vrot.slane %v738_v43, %v2651_v41 }
 0x182   : > { %v716_v44 = vpop.permute.xlu0 %715  ;;  %v443_v45 = vpop.permute.xlu1 %442 }
 0x183   : > { %v721_v46 = vcombine.low %v646_v17, %v716_v44  ;;  %v722_v47 = vcombine.high %v646_v17, %v716_v44 }
 0x185   : > { %v729_v51 = vrot.slane %v721_v46, %v2651_v41  ;;  %v736_v52 = vrot.slane %v722_v47, %v2651_v41 }
 0x186   : > { %v446_v53 = vpop.permute.xlu0 %445  ;;  %v449_v54 = vpop.permute.xlu1 %448 }
 0x187   : > { %v753_v55 = vcombine.low %v729_v51, %v745_v49  ;;  %v754_v56 = vcombine.high %v729_v51, %v745_v49  ;;  %v769_v57 = vcombine.low %v736_v52, %v752_v50  ;;  %v770_v58 = vcombine.high %v736_v52, %v752_v50 }
 0x188   : > { %v451_v59 = vcombine.low %v436_v20, %v446_v53  ;;  %v452_v60 = vcombine.high %v436_v20, %v446_v53  ;;  %v467_v61 = vcombine.low %v443_v45, %v449_v54  ;;  %v468_v62 = vcombine.high %v443_v45, %v449_v54 }
 0x189   : > { %v761_v63 = vrot.slane %v753_v55, %v2654_v48  ;;  %v768_v1 = vrot.slane %v754_v56, %v2654_v48  ;;  %v777_v2 = vrot.slane %v769_v57, %v2654_v48  ;;  %v784_v3 = vrot.slane %v770_v58, %v2654_v48 }
 0x18a   : > { %v459_v4 = vrot.slane %v451_v59, %v2651_v41  ;;  %v466_v6 = vrot.slane %v452_v60, %v2651_v41  ;;  %v475_v7 = vrot.slane %v467_v61, %v2651_v41  ;;  %v482_v8 = vrot.slane %v468_v62, %v2651_v41 }
 0x18b   : > { %v789_v9 = vcombine.low %v761_v63, %v768_v1  ;;  %v1987_v11 = vcombine.high %v761_v63, %v768_v1  ;;  %v805_v13 = vcombine.low %v777_v2, %v784_v3  ;;  %v1988_v14 = vcombine.high %v777_v2, %v784_v3 }
 0x18c   : > { %v483_v15 = vcombine.low %v459_v4, %v475_v7  ;;  %v484_v16 = vcombine.high %v459_v4, %v475_v7  ;;  %v499_v17 = vcombine.low %v466_v6, %v482_v8  ;;  %v500_v18 = vcombine.high %v466_v6, %v482_v8 }
 0x18d   : > { %v796_v19 = vrot.slane %v789_v9, %v2651_v41  ;;  %v804_v20 = vrot.slane %v1987_v11, %v2651_v41  ;;  %v812_v21 = vrot.slane %v805_v13, %v2651_v41  ;;  %v820_v22 = vrot.slane %v1988_v14, %v2651_v41 }
 0x18e   : > { %v491_v23 = vrot.slane %v483_v15, %v2654_v48  ;;  %v498_v24 = vrot.slane %v484_v16, %v2654_v48  ;;  %v507_v25 = vrot.slane %v499_v17, %v2654_v48  ;;  %v514_v26 = vrot.slane %v500_v18, %v2654_v48 }
 0x18f   : > { %v821_v27 = vcombine.low %v796_v19, %v804_v20  ;;  %v837_v28 = vcombine.low %v812_v21, %v820_v22  ;;  %v822_v30 = vcombine.high %v796_v19, %v804_v20  ;;  %v838_v31 = vcombine.high %v812_v21, %v820_v22 }
 0x190   : > { %v519_v32 = vcombine.low %v491_v23, %v498_v24  ;;  %v1979_v33 = vcombine.high %v491_v23, %v498_v24  ;;  %v535_v34 = vcombine.low %v507_v25, %v514_v26  ;;  %v1980_v35 = vcombine.high %v507_v25, %v514_v26 }
 0x191   : > { %v829_v36 = vrot.slane %v821_v27, %v2654_v48  ;;  %v845_v37 = vrot.slane %v837_v28, %v2654_v48  ;;  %v836_v45 = vrot.slane %v822_v30, %v2654_v48  ;;  %v852_v46 = vrot.slane %v838_v31, %v2654_v48 }
 0x192   : > { %v526_v38 = vrot.slane %v519_v32, %v2651_v41  ;;  %v534_v39 = vrot.slane %v1979_v33, %v2651_v41  ;;  %v542_v40 = vrot.slane %v535_v34, %v2651_v41  ;;  %v550_v42 = vrot.slane %v1980_v35, %v2651_v41  ;;  %v863_v35 = vpop.permute.xlu0 %862 }
 0x193   : > { %v853_v43 = vcombine.low %v829_v36, %v845_v37  ;;  %v854_v44 = vcombine.high %v829_v36, %v845_v37  ;;  %v855_v56 = vcombine.low %v836_v45, %v852_v46  ;;  %v856_v57 = vcombine.high %v836_v45, %v852_v46 }
 0x194   : > { %v551_v47 = vcombine.low %v526_v38, %v534_v39  ;;  %v567_v49 = vcombine.low %v542_v40, %v550_v42  ;;  %v552_v58 = vcombine.high %v526_v38, %v534_v39  ;;  %v568_v59 = vcombine.high %v542_v40, %v550_v42 }
 0x195   : > { %v857_v50 = vpack.c.bf16 %v853_v43, %v853_v43  ;;  %v858_v51 = vpack.c.bf16 %v854_v44, %v854_v44  ;;  %v859_v62 = vpack.c.bf16 %v855_v56, %v855_v56  ;;  %v860_v63 = vpack.c.bf16 %v856_v57, %v856_v57 }
 0x196   : > { %v559_v52 = vrot.slane %v551_v47, %v2654_v48  ;;  %v575_v53 = vrot.slane %v567_v49, %v2654_v48  ;;  %v566_v3 = vrot.slane %v552_v58, %v2654_v48  ;;  %v582_v4 = vrot.slane %v568_v59, %v2654_v48 }
 0x197   : > { %v1016_v54 = vsel %vm1011_vm2, %v857_v50, 0  ;;  %v1062_v55 = vsel %vm1011_vm2, %v858_v51, 0  ;;  %v1108_v6 = vsel %vm1011_vm2, %v859_v62, 0  ;;  %v1154_v7 = vsel %vm1011_vm2, %v860_v63, 0 }
 0x198   : > { %2078 = vmatpush3.bf16.xpose.msra.mxu1 %v1016_v54  ;;  %2084 = vmatpush3.bf16.xpose.msra.mxu0 %v1062_v55  ;;  %v583_v60 = vcombine.low %v559_v52, %v575_v53  ;;  %v584_v61 = vcombine.high %v559_v52, %v575_v53  ;;  %v585_v8 = vcombine.low %v566_v3, %v582_v4 }
 0x199   : > { %2089 = vmatprep.subr.bf16.mxu1 %v2430_v0  ;;  %2095 = vmatprep.subr.bf16.mxu0 %v2430_v0  ;;  %v586_v9 = vcombine.high %v566_v3, %v582_v4 }
 0x19a   : > { %v587_v1 = vpack.c.bf16 %v583_v60, %v583_v60  ;;  %v588_v2 = vpack.c.bf16 %v584_v61, %v584_v61  ;;  %v589_v11 = vpack.c.bf16 %v585_v8, %v585_v8 }
 0x19b   : > { %v590_v13 = vpack.c.bf16 %v586_v9, %v586_v9 }
 0x19f   : > { %2080 = vmatmul.mubr.msk.bf16.vlgmr.msra.gmra.mxu1 %vm1011_vm2, %v587_v1  ;;  %2086 = vmatmul.mubr.msk.bf16.vlgmr.msra.gmra.mxu0 %vm1011_vm2, %v588_v2 }
 0x1a0   : > { %2090 = vmatpush3.bf16.xpose.msra.mxu1 %v1108_v6  ;;  %2096 = vmatpush3.bf16.xpose.msra.mxu0 %v1154_v7 }
 0x1a1   : > { %2091 = vmatprep.mubr.msk.bf16.mxu1 %vm2431_vm0, %v2430_v0  ;;  %2097 = vmatprep.mubr.msk.bf16.mxu0 %vm2431_vm0, %v2430_v0 }
 0x1a2   : > { %2101 = vmatprep.subr.bf16.mxu1 %v2430_v0  ;;  %2107 = vmatprep.subr.bf16.mxu0 %v2430_v0 }
 0x1a7   : > { %2092 = vmatmul.mubr.msk.bf16.vlgmr.msra.gmra.mxu1 %vm1011_vm2, %v589_v11  ;;  %2098 = vmatmul.mubr.msk.bf16.vlgmr.msra.gmra.mxu0 %vm1011_vm2, %v590_v13 }
 0x1a8   : > { %2103 = vmatprep.mubr.msk.bf16.mxu1 %vm2431_vm0, %v2430_v0  ;;  %2109 = vmatprep.mubr.msk.bf16.mxu0 %vm2431_vm0, %v2430_v0 }
 0x25f   : > { %v1052_v14 = vpop.f32.mrf.mxu1  ;;  %v1098_v15 = vpop.f32.mrf.mxu0 }
 0x260   : > { %v1199_v16 = vsel %vm1011_vm2, %v1098_v15, -inf  ;;  %v1196_v17 = vsel %vm1011_vm2, %v1052_v14, -inf }
 0x261   : > { %1200 = vmax.xlane.f32.xlu1 %v1199_v16  ;;  %v2087_v18 = vpop.f32.mrf.mxu0  ;;  %1197 = vmax.xlane.f32.xlu0 %v1196_v17  ;;  %v2081_v19 = vpop.f32.mrf.mxu1 }
 0x263   : > { %v1055_v20 = vpop.f32.mrf.mxu1  ;;  %v1101_v21 = vpop.f32.mrf.mxu0 }
 0x265   : > { %v2082_v22 = vpop.f32.mrf.mxu1  ;;  %v2088_v23 = vpop.f32.mrf.mxu0 }
 0x267   : > { %v2710_v24 = vpop.f32.mrf.mxu1  ;;  %v2712_v25 = vpop.f32.mrf.mxu0 }
 0x268   : > { %v1205_v33 = vsel %vm1011_vm2, %v2712_v25, -inf  ;;  %v1202_v34 = vsel %vm1011_vm2, %v2710_v24, -inf }
 0x269   : > { %v2093_v26 = vpop.f32.mrf.mxu1  ;;  %v2099_v27 = vpop.f32.mrf.mxu0 }
 0x26b   : > { %v1147_v28 = vpop.f32.mrf.mxu1  ;;  %v1193_v30 = vpop.f32.mrf.mxu0 }
 0x26d   : > { %v2094_v31 = vpop.f32.mrf.mxu1  ;;  %v2100_v32 = vpop.f32.mrf.mxu0 }
 0x272   : > { %865 = vrot.lane.b32.xlu1 %v2647_v29, %s2434_s16  ;;  %s2440_s16 = smov [#allocation8]  }
 0x277   : > { %868 = vrot.lane.b32.xlu0 %v2647_v29, %s2432_s28 }
 0x296   : > { %1206 = vmax.xlane.f32.xlu0 %v1205_v33  ;;  %1203 = vmax.xlane.f32.xlu1 %v1202_v34 }
 0x2ea   : > { %v2722_v36 = vpop.xlane.xlu1 %1200  ;;  %v2724_v37 = vpop.xlane.xlu0 %1197 }
 0x2eb   : > { %v1221_v38 = vsub.f32 %v1098_v15, %v2722_v36  ;;  %v1220_v39 = vsub.f32 %v1052_v14, %v2724_v37 }
 0x2ed   : > { %v1226_v40 = vmul.f32 1.442695, %v1221_v38  ;;  %v1224_v42 = vmul.f32 1.442695, %v1220_v39 }
 0x2ee   : > { %v866_v43 = vpop.permute.xlu1 %865  ;;  %v869_v44 = vpop.permute.xlu0 %868 }
 0x2ef   : > { %v871_v45 = vcombine.low %v2647_v29, %v866_v43  ;;  %v872_v46 = vcombine.high %v2647_v29, %v866_v43  ;;  %v887_v47 = vcombine.low %v863_v35, %v869_v44  ;;  %2249 = vpow2.f32 %v1226_v40 }
 0x2f0   : > { %v888_v49 = vcombine.high %v863_v35, %v869_v44  ;;  %2251 = vpow2.f32 %v1224_v42 }
 0x2f1   : > { %v879_v50 = vrot.slane %v871_v45, %v2651_v41  ;;  %v886_v51 = vrot.slane %v872_v46, %v2651_v41  ;;  %v895_v52 = vrot.slane %v887_v47, %v2651_v41 }
 0x2f2   : > { %v902_v53 = vrot.slane %v888_v49, %v2651_v41 }
 0x2f3   : > { %v903_v54 = vcombine.low %v879_v50, %v895_v52  ;;  %v904_v55 = vcombine.high %v879_v50, %v895_v52 }
 0x2f4   : > { %v919_v56 = vcombine.low %v886_v51, %v902_v53  ;;  %v920_v57 = vcombine.high %v886_v51, %v902_v53 }
 0x2f5   : > { %v911_v58 = vrot.slane %v903_v54, %v2654_v48  ;;  %v918_v29 = vrot.slane %v904_v55, %v2654_v48 }
 0x2f6   : > { %v927_v59 = vrot.slane %v919_v56, %v2654_v48  ;;  %v934_v60 = vrot.slane %v920_v57, %v2654_v48  ;;  %v1209_v56 = vsub.f32 -inf, %v2722_v36 }
 0x2f7   : > { %v939_v61 = vcombine.low %v911_v58, %v918_v29  ;;  %v1989_v62 = vcombine.high %v911_v58, %v918_v29 }
 0x2f8   : > { %v955_v63 = vcombine.low %v927_v59, %v934_v60  ;;  %v1990_v1 = vcombine.high %v927_v59, %v934_v60  ;;  %v1208_v59 = vsub.f32 -inf, %v2724_v37 }
 0x2f9   : > { %v946_v2 = vrot.slane %v939_v61, %v2651_v41  ;;  %v954_v3 = vrot.slane %v1989_v62, %v2651_v41 }
 0x2fa   : > { %v962_v4 = vrot.slane %v955_v63, %v2651_v41  ;;  %v970_v6 = vrot.slane %v1990_v1, %v2651_v41  ;;  %v1214_v63 = vmul.f32 1.442695, %v1209_v56 }
 0x2fb   : > { %v971_v7 = vcombine.low %v946_v2, %v954_v3  ;;  %v972_v8 = vcombine.high %v946_v2, %v954_v3  ;;  %v1212_v2 = vmul.f32 1.442695, %v1208_v59 }
 0x2fc   : > { %v987_v9 = vcombine.low %v962_v4, %v970_v6  ;;  %v988_v11 = vcombine.high %v962_v4, %v970_v6  ;;  %v2250_v13 = vpop.eup %2249 }
 0x2fd   : > { %v979_v14 = vrot.slane %v971_v7, %v2654_v48  ;;  %v986_v15 = vrot.slane %v972_v8, %v2654_v48  ;;  %v1239_v16 = vsel %vm1011_vm2, %v2250_v13, 0.0  ;;  %v2252_v19 = vpop.eup %2251  ;;  %v1253_v35 = vpack.c.bf16 %v2250_v13, %v2250_v13 }
 0x2fe   : > { %v995_v17 = vrot.slane %v987_v9, %v2654_v48  ;;  %v1002_v18 = vrot.slane %v988_v11, %v2654_v48  ;;  %1240 = vadd.xlane.f32.xlu1 %v1239_v16  ;;  %v1236_v20 = vsel %vm1011_vm2, %v2252_v19, 0.0  ;;  %v1252_v34 = vpack.c.bf16 %v2252_v19, %v2252_v19 }
 0x2ff   : > { %1237 = vadd.xlane.f32.xlu0 %v1236_v20 }
 0x300   : > { %v1003_v21 = vcombine.low %v979_v14, %v995_v17  ;;  %v1004_v22 = vcombine.high %v979_v14, %v995_v17  ;;  %v1005_v23 = vcombine.low %v986_v15, %v1002_v18  ;;  %v1006_v26 = vcombine.high %v986_v15, %v1002_v18 }
 0x302   : > { %v1007_v27 = vpack.c.bf16 %v1003_v21, %v1003_v21  ;;  %v1008_v28 = vpack.c.bf16 %v1004_v22, %v1004_v22  ;;  %v1009_v32 = vpack.c.bf16 %v1005_v23, %v1005_v23  ;;  %v1010_v33 = vpack.c.bf16 %v1006_v26, %v1006_v26 }
 0x304   : > { %v1261_v30 = vsel %vm1259_vm3, %v1007_v27, 0  ;;  %v1307_v31 = vsel %vm1259_vm3, %v1008_v28, 0  ;;  %v1353_v38 = vsel %vm1259_vm3, %v1009_v32, 0  ;;  %v1399_v39 = vsel %vm1259_vm3, %v1010_v33, 0 }
 0x305   : > { %2102 = vmatpush3.bf16.msra.mxu1 %v1261_v30  ;;  %2108 = vmatpush3.bf16.msra.mxu0 %v1307_v31 }
 0x306   : > { %2113 = vmatprep.subr.bf16.mxu1 %v2430_v0  ;;  %2119 = vmatprep.subr.bf16.mxu0 %v2430_v0 }
 0x308   : > { %2104 = vmatmul.mubr.msk.bf16.vlgmr.msra.gmra.mxu1 %vm1011_vm2, %v1252_v34  ;;  %2110 = vmatmul.mubr.msk.bf16.vlgmr.msra.gmra.mxu0 %vm1011_vm2, %v1253_v35 }
 0x309   : > { %2114 = vmatpush3.bf16.msra.mxu1 %v1353_v38  ;;  %2120 = vmatpush3.bf16.msra.mxu0 %v1399_v39 }
 0x30a   : > { %2115 = vmatprep.mubr.msk.bf16.mxu1 %vm2431_vm0, %v2430_v0  ;;  %2121 = vmatprep.mubr.msk.bf16.mxu0 %vm2431_vm0, %v2430_v0 }
 0x30b   : > { %2125 = vmatprep.subr.bf16.mxu1 %v2430_v0  ;;  %2133 = vmatprep.subr.bf16.mxu0 %v2430_v0 }
 0x31f   : > { %v1207_v40 = vpop.xlane.xlu0 %1206  ;;  %v1204_v42 = vpop.xlane.xlu1 %1203 }
 0x320   : > { %v1223_v43 = vsub.f32 %v2712_v25, %v1207_v40  ;;  %v1222_v44 = vsub.f32 %v2710_v24, %v1204_v42  ;;  %v1211_v57 = vsub.f32 -inf, %v1207_v40  ;;  %v1210_v60 = vsub.f32 -inf, %v1204_v42 }
 0x322   : > { %v1230_v45 = vmul.f32 1.442695, %v1223_v43  ;;  %v1228_v46 = vmul.f32 1.442695, %v1222_v44  ;;  %v1218_v1 = vmul.f32 1.442695, %v1211_v57 }
 0x323   : > { %v1216_v3 = vmul.f32 1.442695, %v1210_v60 }
 0x324   : > { %2253 = vpow2.f32 %v1230_v45 }
 0x325   : > { %2255 = vpow2.f32 %v1228_v46 }
 0x326   : > { %2257 = vpow2.f32 %v1214_v63 }
 0x327   : > { %2259 = vpow2.f32 %v1218_v1 }
 0x328   : > { %2261 = vpow2.f32 %v1212_v2 }
 0x329   : > { %2263 = vpow2.f32 %v1216_v3 }
 0x331   : > { %v2254_v47 = vpop.eup %2253 }
 0x332   : > { %v1245_v49 = vsel %vm1011_vm2, %v2254_v47, 0.0  ;;  %v1255_v50 = vpack.c.bf16 %v2254_v47, %v2254_v47  ;;  %v2256_v51 = vpop.eup %2255 }
 0x333   : > { %1246 = vadd.xlane.f32.xlu1 %v1245_v49  ;;  %v1242_v52 = vsel %vm1011_vm2, %v2256_v51, 0.0  ;;  %v1254_v53 = vpack.c.bf16 %v2256_v51, %v2256_v51  ;;  %v2258_v6 = vpop.eup %2257 }
 0x334   : > { %2122 = vmatmul.mubr.msk.bf16.vlgmr.msra.gmra.mxu0 %vm1011_vm2, %v1255_v50  ;;  %1243 = vadd.xlane.f32.xlu0 %v1242_v52  ;;  %v2260_v7 = vpop.eup %2259  ;;  %v1233_v11 = vmul.f32 0.0, %v2258_v6 }
 0x335   : > { %2137 = vmatprep.mubr.msk.bf16.mxu0 %vm2431_vm0, %v2430_v0  ;;  %2116 = vmatmul.mubr.msk.bf16.vlgmr.msra.gmra.mxu1 %vm1011_vm2, %v1254_v53  ;;  %v2262_v8 = vpop.eup %2261  ;;  %v1235_v37 = vmul.f32 0.0, %v2260_v7 }
 0x336   : > { %2129 = vmatprep.mubr.msk.bf16.mxu1 %vm2431_vm0, %v2430_v0  ;;  %v2264_v9 = vpop.eup %2263  ;;  %v1232_v14 = vmul.f32 0.0, %v2262_v8 }
 0x337   : > { %v1234_v17 = vmul.f32 0.0, %v2264_v9 }
 0x387   : > { %v1241_v4 = vpop.xlane.xlu1 %1240 }
 0x388   : > { %v1238_v36 = vpop.xlane.xlu0 %1237  ;;  %v1249_v15 = vadd.f32 %v1241_v4, %v1233_v11 }
 0x389   : > { %v1248_v19 = vadd.f32 %v1238_v36, %v1232_v14 }
 0x38a   : > { %2265 = vrcp.f32 %v1249_v15 }
 0x397   : > { %v2266_v23 = vpop.eup %2265 }
 0x3bc   : > { %v1247_v13 = vpop.xlane.xlu1 %1246 }
 0x3bd   : > { %v1244_v16 = vpop.xlane.xlu0 %1243  ;;  %v1251_v18 = vadd.f32 %v1247_v13, %v1235_v37 }
 0x3be   : > { %v1250_v20 = vadd.f32 %v1244_v16, %v1234_v17 }
 0x3bf   : > { %2267 = vrcp.f32 %v1251_v18 }
 0x3c0   : > { %2269 = vrcp.f32 %v1248_v19 }
 0x3c1   : > { %2271 = vrcp.f32 %v1250_v20 }
 0x3c8   : > { %v1297_v24 = vpop.f32.mrf.mxu1  ;;  %v1343_v25 = vpop.f32.mrf.mxu0 }
 0x3c9   : > { %v1442_v21 = vadd.f32 %v1343_v25, %v1233_v11  ;;  %v1441_v26 = vadd.f32 %v1297_v24, %v1232_v14 }
 0x3ca   : > { %v2105_v54 = vpop.f32.mrf.mxu1  ;;  %v2111_v55 = vpop.f32.mrf.mxu0 }
 0x3cb   : > { %v1450_v33 = vmul.f32 %v2266_v23, %v1442_v21  ;;  %v2241_v54 = vld [vmem:[#allocation5 + $0x8] sm:$0xff]  }
 0x3cc   : > { %v1300_v58 = vpop.f32.mrf.mxu1  ;;  %v1346_v29 = vpop.f32.mrf.mxu0  ;;  %2126 = vmatpush3.bf16.msra.mxu1 %v2241_v54 }
 0x3cd   : > { %v2268_v28 = vpop.eup %2267  ;;  %2127 = vmatprep.subr.bf16.mxu1 %v2430_v0 }
 0x3ce   : > { %v2106_v61 = vpop.f32.mrf.mxu1  ;;  %v2112_v62 = vpop.f32.mrf.mxu0 }
 0x3cf   : > { %v2270_v32 = vpop.eup %2269  ;;  %v2242_v62 = vld [vmem:[#allocation5] sm:$0xff]  }
 0x3d0   : > { %v2272_v38 = vpop.eup %2271  ;;  %v1449_v42 = vmul.f32 %v2270_v32, %v1441_v26  ;;  %2128 = vmatpush3.bf16.msra.mxu1 %v2242_v62 }
 0x3d1   : > { %2141 = vmatprep.subr.bf16.mxu1 %v2430_v0 }
 0x3f4   : > { %v1435_v22 = vpop.f32.mrf.mxu0 }
 0x3f5   : > { %v1444_v27 = vadd.f32 %v1435_v22, %v1235_v37  ;;  %v1389_v30 = vpop.f32.mrf.mxu1 }
 0x3f6   : > { %v2123_v31 = vpop.f32.mrf.mxu0  ;;  %v1443_v34 = vadd.f32 %v1389_v30, %v1234_v17 }
 0x3f7   : > { %v1452_v35 = vmul.f32 %v2268_v28, %v1444_v27  ;;  %v2117_v39 = vpop.f32.mrf.mxu1  ;;  %v1613_v28 = vsub.s32 3, %v2630_v10 }
 0x3f8   : > { %v1438_v40 = vpop.f32.mrf.mxu0  ;;  %v1451_v43 = vmul.f32 %v2272_v38, %v1443_v34 }
 0x3f9   : > { %v1469_v44 = vcombine.low %v1450_v33, %v1452_v35  ;;  %v1470_v45 = vcombine.high %v1450_v33, %v1452_v35  ;;  %v1392_v46 = vpop.f32.mrf.mxu1  ;;  %v1614_v30 = vrot.slane %v2636_v12, %v1613_v28 }
 0x3fa   : > { %v2124_v47 = vpop.f32.mrf.mxu0  ;;  %v1453_v49 = vcombine.low %v1449_v42, %v1451_v43  ;;  %v1454_v50 = vcombine.high %v1449_v42, %v1451_v43  ;;  %v2243_v46 = vld [vmem:[#allocation7 + $0x8] sm:$0xff]  }
 0x3fb   : > { %v1477_v51 = vrot.slane %v1469_v44, %v2651_v41  ;;  %v1484_v52 = vrot.slane %v1470_v45, %v2651_v41  ;;  %v2118_v53 = vpop.f32.mrf.mxu1  ;;  %2134 = vmatpush3.bf16.msra.mxu0 %v2243_v46  ;;  %v2244_v47 = vld [vmem:[#allocation7] sm:$0xff]  }
 0x3fc   : > { %v1461_v24 = vrot.slane %v1453_v49, %v2651_v41  ;;  %v1468_v25 = vrot.slane %v1454_v50, %v2651_v41  ;;  %2135 = vmatprep.subr.bf16.mxu0 %v2430_v0  ;;  %v2246_v49 = vld [vmem:[%s2870_s6 + $0x10] sm:$0xff]   ;;  %v1687_v53 = vsub.s32 4, %v2630_v10 }
 0x3fe   : > { %v1485_v55 = vcombine.low %v1461_v24, %v1477_v51  ;;  %v1486_v56 = vcombine.high %v1461_v24, %v1477_v51  ;;  %v1501_v57 = vcombine.low %v1468_v25, %v1484_v52  ;;  %v1502_v58 = vcombine.high %v1468_v25, %v1484_v52 }
 0x3ff   : > { %2136 = vmatpush3.bf16.msra.mxu0 %v2244_v47  ;;  %v1692_v24 = vsub.s32 5, %v2630_v10  ;;  %v1688_v25 = vrot.slane %v2636_v12, %v1687_v53 }
 0x400   : > { %v1493_v29 = vrot.slane %v1485_v55, %v2654_v48  ;;  %v1500_v59 = vrot.slane %v1486_v56, %v2654_v48  ;;  %v1509_v60 = vrot.slane %v1501_v57, %v2654_v48  ;;  %v1516_v61 = vrot.slane %v1502_v58, %v2654_v48 }
 0x401   : > { %v1693_v56 = vrot.slane %v2636_v12, %v1692_v24 }
 0x402   : > { %v1521_v63 = vcombine.low %v1493_v29, %v1500_v59  ;;  %v1999_v1 = vcombine.high %v1493_v29, %v1500_v59  ;;  %v1537_v2 = vcombine.low %v1509_v60, %v1516_v61  ;;  %v2000_v3 = vcombine.high %v1509_v60, %v1516_v61  ;;  %v2247_v59 = vld [vmem:[%s2870_s6 + $0x8] sm:$0xff]   ;;  %v2248_v60 = vld [vmem:[%s2870_s6] sm:$0xff]  }
 0x403   : > { %v2004_v61 = vld [vmem:[%s2872_s8] ss:$0 sm:$0xff] }
 0x404   : > { %v1528_v4 = vrot.slane %v1521_v63, %v2651_v41  ;;  %v1536_v6 = vrot.slane %v1999_v1, %v2651_v41  ;;  %v1544_v7 = vrot.slane %v1537_v2, %v2651_v41  ;;  %v1552_v36 = vrot.slane %v2000_v3, %v2651_v41 }
 0x406   : > { %v1554_v8 = vcombine.high %v1528_v4, %v1536_v6  ;;  %v1570_v9 = vcombine.high %v1544_v7, %v1552_v36  ;;  %v1553_v11 = vcombine.low %v1528_v4, %v1536_v6  ;;  %v1569_v13 = vcombine.low %v1544_v7, %v1552_v36 }
 0x408   : > { %v1568_v37 = vrot.slane %v1554_v8, %v2654_v48  ;;  %v1584_v14 = vrot.slane %v1570_v9, %v2654_v48  ;;  %v1561_v15 = vrot.slane %v1553_v11, %v2654_v48  ;;  %v1577_v16 = vrot.slane %v1569_v13, %v2654_v48 }
 0x40a   : > { %v1587_v17 = vcombine.low %v1568_v37, %v1584_v14  ;;  %v1586_v18 = vcombine.high %v1561_v15, %v1577_v16  ;;  %v1588_v19 = vcombine.high %v1568_v37, %v1584_v14  ;;  %v1585_v20 = vcombine.low %v1561_v15, %v1577_v16 }
 0x40c   : > { %1594 = vrot.lane.b32.xlu1 %v1587_v17, %s2437_s25  ;;  %1590 = vrot.lane.b32.xlu0 %v1586_v18, %s2438_s27  ;;  %s365_s27 = sand.u32 1, %s2415_s10   ;;  %s2359_s25 = sshll.u32 %s2440_s16, 4  ;;  %s2360_s25 = int_to_ptr.vmem [resolvable:$false] %s2359_s25 }
 0x40d   : > { %s1861_s28 = scalar_lea.sflag [#allocation4], %s365_s27  ;;  %s2361_s13 = scalar_lea.vmem %s2360_s25, 256 }
 0x410   : > { %1598 = vrot.lane.b32.xlu1 %v1588_v19, %s2439_s29  ;;  %s1974_s29 = sshll.u32 %s365_s27, 3 }
 0x411   : > { %s367_s17 = scalar_lea.vmem [#allocation8], %s1974_s29 }
 0x412   : > { %s1874_s22 = sshll.u32 %s367_s17, 4  ;;  %s1875_s22 = int_to_ptr.vmem [resolvable:$true] %s1874_s22 }
 0x413   : > { %s2355_s14 = scalar_lea.vmem %s1875_s22, 128  ;;  %p2362_p7 = scmp.lt.s32.totalorder %s1875_s22, %s2360_s25 }
 0x414   : > { %p2356_p10 = scmp.ne.s32.totalorder %s1875_s22, %s2355_s14  ;;  %p2363_p8 = scmp.lt.s32.totalorder %s2361_s13, %s2355_s14 }
 0x416   : > { %p2357_p2 = pnand %p2356_p10, %p2884_p12  ;;  %p2364_p11 = por %p2363_p8, %p2362_p7 }
 0x418   : > { %p2358_p4 = pneg %p2357_p2 }
 0x41a   : > { %p2365_p0 = pnand %p2364_p11, %p2358_p4 }
 0x47e   : > { %v1595_v41 = vpop.permute.xlu1 %1594  ;;  %v1591_v21 = vpop.permute.xlu0 %1590 }
 0x47f   : > { %v1601_v22 = vsel %vm1011_vm2, %v1585_v20, %v1591_v21 }
 0x480   : > { %v1603_v26 = vsel %vm1602_vm4, %v1601_v22, %v1595_v41 }
 0x482   : > { %v1599_v23 = vpop.permute.xlu1 %1598 }
 0x483   : > { %v1605_v27 = vsel %vm1604_vm5, %v1603_v26, %v1599_v23 }
 0x484   : > { %v1606_v48 = vpack.c.bf16 %v1605_v27, %v1605_v27 }
 0x486   : > { %2130 = vmatmul.mubr.msk.bf16.vlgmr.msra.gmra.mxu1 %vm397_vm1, %v1606_v48 }
 0x487   : > { %2149 = vmatprep.mubr.msk.bf16.mxu1 %vm2431_vm0, %v2430_v0 }
 0x546   : > { %v1664_v31 = vpop.f32.mrf.mxu1 }
 0x547   : > { %v1665_v32 = vadd.f32 %v1664_v31, %v1614_v30 }
 0x548   : > { %v2131_v33 = vpop.f32.mrf.mxu1 }
 0x549   : > { %v1670_v34 = vadd.f32 %v1665_v32, %v2613_v5  ;;  %v2245_v5 = vld [vmem:[%s2870_s6 + $0x18] sm:$0xff]  }
 0x54a   : > { %v1667_v35 = vpop.f32.mrf.mxu1  ;;  %2142 = vmatpush3.bf16.msra.mxu1 %v2245_v5 }
 0x54b   : > { %v1671_v38 = vsel %vm397_vm1, %v1670_v34, 0.0  ;;  %2143 = vmatprep.subr.bf16.mxu1 %v2430_v0 }
 0x54c   : > { %1672 = vadd.xlane.f32.xlu0 %v1671_v38  ;;  %v2132_v39 = vpop.f32.mrf.mxu1 }
 0x54e   : > { %2144 = vmatpush3.bf16.msra.mxu1 %v2246_v49 }
 0x54f   : > { %2145 = vmatprep.subr.bf16.mxu1 %v2430_v0 }
 0x552   : > { %2146 = vmatpush3.bf16.msra.mxu1 %v2247_v59 }
 0x553   : > { %2147 = vmatprep.subr.bf16.mxu1 %v2430_v0  ;;  %v1773_v0 = vsub.s32 6, %v2630_v10 }
 0x555   : > { %v1774_v7 = vrot.slane %v2636_v12, %v1773_v0 }
 0x556   : > { %2148 = vmatpush3.bf16.msra.mxu1 %v2248_v60 }
 0x5d5   : > { %v1673_v40 = vpop.xlane.xlu0 %1672 }
 0x5d6   : > { %v1675_v42 = vmul.f32 0.03125, %v1673_v40 }
 0x5d8   : > { %v1676_v43 = vsub.f32 %v1670_v34, %v1675_v42 }
 0x5da   : > { %v1677_v44 = vmul.f32 %v1676_v43, %v1676_v43 }
 0x5dc   : > { %v1678_v45 = vsel %vm397_vm1, %v1677_v44, 0.0 }
 0x5dd   : > { %1679 = vadd.xlane.f32.xlu1 %v1678_v45 }
 0x666   : > { %v1680_v50 = vpop.xlane.xlu1 %1679 }
 0x667   : > { %v1681_v51 = vmul.f32 0.03125, %v1680_v50 }
 0x669   : > { %v1682_v52 = vadd.f32 1e-05, %v1681_v51 }
 0x66b   : > { %2273 = vrsqrt.f32 %v1682_v52 }
 0x678   : > { %v2274_v54 = vpop.eup %2273 }
 0x679   : > { %v1684_v55 = vmul.f32 %v2274_v54, %v1676_v43 }
 0x67b   : > { %v1689_v57 = vmul.f32 %v1688_v25, %v1684_v55 }
 0x67d   : > { %v1694_v58 = vadd.f32 %v1693_v56, %v1689_v57 }
 0x67f   : > { %v1695_v29 = vpack.c.bf16 %v1694_v58, %v1694_v58 }
 0x681   : > { %2138 = vmatmul.mubr.msk.bf16.vlgmr.msra.gmra.mxu0 %vm397_vm1, %v1695_v29 }
 0x741   : > { %v1755_v62 = vpop.f32.mrf.mxu0 }
 0x742   : > { %v1756_v63 = vadd.f32 %v2004_v61, %v1755_v62 }
 0x743   : > { %v2139_v1 = vpop.f32.mrf.mxu0 }
 0x744   : > { %v1761_v2 = vmax.f32 %v1756_v63, 0.0 }
 0x745   : > { %v1758_v3 = vpop.f32.mrf.mxu0 }
 0x746   : > { %v1762_v4 = vpack.c.bf16 %v1761_v2, %v1761_v2 }
 0x747   : > { %v2140_v6 = vpop.f32.mrf.mxu0 }
 0x748   : > { %2150 = vmatmul.mubr.msk.bf16.vlgmr.msra.gmra.mxu1 %vm1799_vm6, %v1762_v4 }
 0x808   : > { %v1837_v36 = vpop.f32.mrf.mxu1 }
 0x809   : > { %v1838_v8 = vadd.f32 %v1837_v36, %v1774_v7 }
 0x80a   : > { %v2151_v9 = vpop.f32.mrf.mxu1 }
 0x80b   : > { %v1843_v11 = vadd.f32 %v1838_v8, %v1694_v58 }
 0x80c   : > { %v1840_v13 = vpop.f32.mrf.mxu1 }
 0x80d   : > { %v1844_v37 = vsel %vm397_vm1, %v1843_v11, 0.0 }
 0x80e   : > { %1845 = vadd.xlane.f32.xlu0 %v1844_v37  ;;  %v2152_v14 = vpop.f32.mrf.mxu1 }
 0x897   : > { %v1846_v15 = vpop.xlane.xlu0 %1845 }
 0x898   : > { %v1847_v16 = vmul.f32 0.03125, %v1846_v15 }
 0x89a   : > { %v1848_v17 = vsub.f32 %v1843_v11, %v1847_v16 }
 0x89c   : > { %v1849_v18 = vmul.f32 %v1848_v17, %v1848_v17 }
 0x89e   : > { %v1850_v19 = vsel %vm397_vm1, %v1849_v18, 0.0 }
 0x89f   : > { %1851 = vadd.xlane.f32.xlu0 %v1850_v19 }
 0x928   : > { %v1852_v10 = vpop.xlane.xlu0 %1851 }
 0x929   : > { %v1853_v12 = vmul.f32 0.03125, %v1852_v10 }
 0x92b   : > { %v1854_v20 = vadd.f32 1e-05, %v1853_v12 }
 0x92d   : > { %2275 = vrsqrt.f32 %v1854_v20 }
 0x93a   : > { %v2276_v41 = vpop.eup %2275 }
 0x93b   : > { %v1856_v21 = vmul.f32 %v2276_v41, %v1848_v17 }
 0x93d   : > { %v1857_v22 = vmul.f32 %v1856_v21, %v1688_v25 }
 0x93f   : > { %v1858_v23 = vadd.f32 %v1857_v22, %v1693_v56 }
 0x941   : > { %1859 = vst.msk [vmem:[%s367_s17] sm:$0xff] %vm397_vm1, %v1858_v23 }
 0x942   : > { %2368 = shalt.err (!%p2365_p0)
}
 0x943   : > { %s2369_s29 = scalar_lea.hbm %s1872_s26, 128  ;;  %s2373_s17 = scalar_lea.hbm %s2873_s9, 256 }
 0x944   : > { %p2370_p6 = scmp.ne.s32.totalorder %s1872_s26, %s2369_s29  ;;  %p2374_p1 = scmp.lt.s32.totalorder %s1872_s26, %s2873_s9 }
 0x945   : > { %p2375_p5 = scmp.lt.s32.totalorder %s2373_s17, %s2369_s29 }
 0x946   : > { %p2371_p9 = pnand %p2370_p6, %p2884_p12 }
 0x947   : > { %p2376_p3 = por %p2375_p5, %p2374_p1 }
 0x948   : > { %p2372_p13 = pneg %p2371_p9 }
 0x94a   : > { %p2377_p10 = pnand %p2376_p3, %p2372_p13 }
 0x94c   : > { %2380 = shalt.err (!%p2377_p10)
}
 0x94d   : > { %2165 = dma.vmem_to_hbm [thread:$0]  (%p2884_p12), %s1875_s22, 128, %s1872_s26, %s1861_s28  }
 0x94e PF: > { %p2187_p2 = scmp.ge.s32.totalorder %s2423_s12, 2  ;;  %s1886_s14 = sand.u32 1, %s2411_s30  }
 0x94f   : > { %p2885_p4 = scmp.ne.s32.totalorder %s2877_s20, 0  ;;  %s1887_s16 = scalar_lea.sflag [#allocation4], %s1886_s14 }
 0x951   : > { %p2178_p7 = pnand %p2187_p2, %p2885_p4 }
 0x953   : > { %p2179_p8 = pneg %p2178_p7 }
 0x955   : > { %2406 = dma.done.wait (%p2179_p8), %s1887_s16, 128  }
 0x956   : > { %2408 = vsyncadd (%p2179_p8), %s1887_s16, 4294967168  ;;  %p21_p11 = scmp.ge.s32.totalorder %s2516_s15, 4   ;;  %s2886_s30 = smov %s2415_s10 }
 0x957   : > { %s2887_s10 = smov %s2419_s11  ;;  %s2888_s11 = smov %s2527_s18 }
 0x958   : > { %s2889_s12 = smov %s2516_s15  ;;  %23 = sbr.rel (!%p21_p11) target bundleno = 5 (0x5), region = 104 }
 0x95d   :  { %1892 = vsyncpa [#allocation3], 1 }
 0x95e   :  { %1894 = vsyncpa [#allocation3 + $0x1], 1 }
 0x95f   :  { %1895 = vsyncpa [#allocation6], 1 }
 0x960   :  { %1896 = vsyncpa [#allocation4], 1 }
 0x961   :  { %1898 = vsyncpa [#allocation4 + $0x1], 1 }

// kernel: tpu_custom_call.1
= control target key start
LH: loop header
LB: loop body
LE: loop exit
PB: predicated region body
PF: predicated region fallthrough
CT: control target
= control target key end

     0   :  { %14 = vsyncpa [#allocation3], 0  ;;  %s2864_s0 = inlined_call_operand.vmem [shape: f32[2,8,32], index: 0, kind: input, shape index: {}]   ;;  %s2865_s1 = inlined_call_operand.vmem [shape: bf16[32,32], index: 1, kind: input, shape index: {}]   ;;  %s2866_s2 = inlined_call_operand.vmem [shape: bf16[32,32], index: 2, kind: input, shape index: {}]   ;;  %s2867_s3 = inlined_call_operand.hbm [shape: bf16[32,32], index: 3, kind: input, shape index: {}]   ;;  %s2868_s4 = inlined_call_operand.hbm [shape: bf16[32,32], index: 4, kind: input, shape index: {}]   ;;  %s2869_s5 = inlined_call_operand.hbm [shape: bf16[32,64], index: 5, kind: input, shape index: {}]   ;;  %s2870_s6 = inlined_call_operand.vmem [shape: bf16[64,32], index: 6, kind: input, shape index: {}]   ;;  %s2871_s7 = inlined_call_operand.vmem [shape: f32[8,32], index: 7, kind: input, shape index: {}]   ;;  %s2872_s8 = inlined_call_operand.vmem [shape: f32[1,64], index: 8, kind: input, shape index: {}]   ;;  %s2873_s9 = inlined_call_operand.hbm [shape: f32[2,8,32], index: 9, kind: output, shape index: {}]  }
   0x1   :  { %15 = vsyncpa [#allocation6], 0 }
   0x2   :  { %16 = vsyncpa [#allocation4], 0 }
   0x3   :  { %18 = vsyncpa [#allocation4 + $0x1], 0  ;;  %s2491_s30 = smov 0   ;;  %s2493_s10 = smov 0  }
   0x4   :  { %s2495_s11 = smov 0   ;;  %s2497_s12 = smov 0  }
   0x5 LB: > { %s2512_s13 = sadd.s32 4294967295, %s2423_s12   ;;  %s1964_s14 = sadd.s32 4294967294, %s2423_s12   ;;  %s2423_s12 = sphi %s2497_s12, %s2889_s12   ;;  %s2419_s11 = sphi %s2495_s11, %s2888_s11   ;;  %s2415_s10 = sphi %s2493_s10, %s2887_s10   ;;  %s2411_s30 = sphi %s2491_s30, %s2886_s30  }
   0x6   : > { %s2516_s15 = sadd.s32 1, %s2423_s12   ;;  %s225_s16 = sadd.s32 1, %s2419_s11 }
   0x7   : > { %s222_s17 = ssub.s32 %s2423_s12, %s2516_s15  ;;  %p235_p0 = scmp.ne.s32.totalorder %s2419_s11, %s2415_s10 }
   0x8   : > { %p223_p1 = scmp.eq.s32.totalorder %s222_s17, 0  ;;  %p236_p2 = scmp.eq.s32.totalorder %s2512_s13, 1 }
   0x9   : > { %p241_p3 = scmp.ne.s32.totalorder %s2415_s10, %s2411_s30  ;;  %p242_p4 = scmp.eq.s32.totalorder %s1964_s14, 1 }
   0xa   : > { %s2527_s18 = scalar_select %p223_p1, %s2419_s11, %s225_s16  }
   0xb   : > { %p2529_p5 = por %p236_p2, %p235_p0  ;;  %p2533_p6 = por %p242_p4, %p241_p3 }
   0xc   : > { %p1965_p7 = scmp.ge.s32.totalorder %s2423_s12, 1  ;;  %p249_p8 = scmp.lt.s32.totalorder %s2423_s12, 3 }
   0xd   : > { %s2876_s19 = scalar_select %p2529_p5, 1, 0 }
   0xe   : > { %s2877_s20 = scalar_select %p2533_p6, 1, 0 }
   0xf   : > { %p2874_p9 = scmp.eq.s32.totalorder %s2512_s13, 0  ;;  %p2540_p10 = pnand %p1965_p7, %p249_p8 }
  0x10   : > { %s2425_s22 = smov [#allocation5]   ;;  %s2426_s25 = smov [#allocation2]  }
  0x11   : > { %p2167_p11 = pneg %p2540_p10  ;;  %s280_s23 = sshll.u32 %s2425_s22, 4  ;;  %s281_s23 = int_to_ptr.vmem [resolvable:$true] %s280_s23 }
  0x12   : > { %s267_s26 = sshll.u32 %s2426_s25, 4  ;;  %s2427_s27 = smov [#allocation7]   ;;  %s268_s26 = int_to_ptr.vmem [resolvable:$true] %s267_s26 }
  0x13   : > { %p2548_p12 = pnand %p2874_p9, %p2167_p11  ;;  %s293_s28 = sshll.u32 %s2427_s27, 4  ;;  %s294_s28 = int_to_ptr.vmem [resolvable:$true] %s293_s28 }
  0x14   : > { %s2288_s29 = scalar_lea.vmem %s281_s23, 256  ;;  %p2296_p3 = scmp.lt.s32.totalorder %s281_s23, %s281_s23 }
  0x15   : > { %p2279_p13 = pneg %p2548_p12  ;;  %p2289_p0 = scmp.ne.s32.totalorder %s281_s23, %s2288_s29 }
  0x16   : > { %p2297_p4 = scmp.lt.s32.totalorder %s2288_s29, %s2288_s29 }
  0x17   : > { %p2291_p1 = pnand %p2289_p0, %p2279_p13 }
  0x18   : > { %p2298_p7 = por %p2297_p4, %p2296_p3 }
  0x19   : > { %p2292_p2 = pneg %p2291_p1 }
  0x1b   : > { %p2299_p8 = pnand %p2298_p7, %p2292_p2 }
  0x1d   : > { %2302 = shalt.err (!%p2299_p8)
}
  0x1e   : > { %s2428_s14 = smov 64   ;;  %s2429_s16 = smov 4  }
  0x1f   : > { %2173 = dma.hbm_to_vmem [thread:$0]  (!%p2548_p12), %s2868_s4, 256, %s281_s23, [#allocation6], %s2428_s14, %s2428_s14, %s2429_s16  }
  0x20   : > { %s2314_s25 = scalar_lea.vmem %s268_s26, 256  ;;  %p2322_p9 = scmp.lt.s32.totalorder %s268_s26, %s268_s26 }
  0x21   : > { %p2315_p11 = scmp.ne.s32.totalorder %s268_s26, %s2314_s25  ;;  %p2323_p6 = scmp.lt.s32.totalorder %s2314_s25, %s2314_s25 }
  0x23   : > { %p2317_p0 = pnand %p2315_p11, %p2279_p13  ;;  %p2324_p3 = por %p2323_p6, %p2322_p9 }
  0x25   : > { %p2318_p1 = pneg %p2317_p0 }
  0x27   : > { %p2325_p2 = pnand %p2324_p3, %p2318_p1 }
  0x29   : > { %2328 = shalt.err (!%p2325_p2)
}
  0x2a   : > { %2170 = dma.hbm_to_vmem [thread:$0]  (!%p2548_p12), %s2867_s3, 256, %s268_s26, [#allocation3], %s2428_s14, %s2428_s14, %s2429_s16  }
  0x2b   : > { %s2340_s23 = scalar_lea.vmem %s294_s28, 256  ;;  %p2348_p11 = scmp.lt.s32.totalorder %s294_s28, %s294_s28 }
  0x2c   : > { %p2341_p4 = scmp.ne.s32.totalorder %s294_s28, %s2340_s23  ;;  %p2349_p0 = scmp.lt.s32.totalorder %s2340_s23, %s2340_s23 }
  0x2e   : > { %p2343_p7 = pnand %p2341_p4, %p2279_p13  ;;  %p2350_p5 = por %p2349_p0, %p2348_p11 }
  0x30   : > { %p2344_p8 = pneg %p2343_p7 }
  0x32   : > { %p2351_p6 = pnand %p2350_p5, %p2344_p8 }
  0x34   : > { %2354 = shalt.err (!%p2351_p6)
}
  0x35   : > { %2176 = dma.hbm_to_vmem [thread:$0]  (!%p2548_p12), %s2869_s5, 256, %s294_s28, [#allocation6], %s2428_s14, %s2428_s14, %s2429_s16  }
  0x36   : > { %325 = sbr.rel (%p2540_p10) target bundleno = 2382 (0x94e), region = 56  ;;  %p2880_p9 = scmp.eq.s32.totalorder (!%p2540_p10), %s2512_s13, 0 }
  0x3b   : > { %2398 = dma.done.wait (%p2880_p9), [#allocation3], 256   ;;  %p2881_p13 = pmov %p2880_p9 }
  0x3c   : > { %p2882_p1 = pmov %p2880_p9 }
  0x3d   : > { %2400 = vsyncadd (%p2881_p13), [#allocation3], 4294967040 }
  0x3e   : > { %2402 = dma.done.wait (%p2882_p1), [#allocation6], 512   ;;  %p2883_p5 = pmov %p2882_p1 }
  0x3f   : > { %p368_p3 = scmp.lt.s32.totalorder %s2512_s13, 1  ;;  %v2430_v0 = vmov 0.0   ;;  %vm2431_vm0 = vmmov 0   ;;  %v2235_v1 = vld [vmem:[%s2866_s2 + $0x8] sm:$0xff]   ;;  %v2237_v3 = vld [vmem:[%s2866_s2] sm:$0xff]   ;;  %vm397_vm1 = vcmask 261120   ;;  %v381_v9 = vlaneseq }
  0x40   : > { %2404 = vsyncadd (%p2883_p5), [#allocation6], 4294966784  ;;  %2061 = vmatprep.subr.bf16.mxu1 %v2430_v0  ;;  %2053 = vmatprep.subr.bf16.mxu0 %v2430_v0  ;;  %v2236_v2 = vld [vmem:[%s2865_s1 + $0x8] sm:$0xff]   ;;  %v2238_v4 = vld [vmem:[%s2865_s1] sm:$0xff]   ;;  %s2432_s28 = smov 104   ;;  %s2433_s14 = smov 120  }
  0x41   : > { %2065 = vmatprep.mubr.msk.bf16.mxu1 %vm2431_vm0, %v2430_v0  ;;  %s369_s21 = scalar_select %p368_p3, %s2512_s13, 1  ;;  %2057 = vmatprep.mubr.msk.bf16.mxu0 %vm2431_vm0, %v2430_v0  ;;  %v2239_v7 = vld [vmem:[#allocation2 + $0x8] sm:$0xff]   ;;  %v2240_v8 = vld [vmem:[#allocation2] sm:$0xff]   ;;  %v2630_v10 = vshrl.u32 %v381_v9, 7  ;;  %v2435_v33 = vmov 1983009808  }
  0x42   : > { %2062 = vmatpush3.bf16.msra.mxu1 %v2235_v1  ;;  %2054 = vmatpush3.bf16.msra.mxu0 %v2236_v2  ;;  %v2636_v12 = vld [vmem:[%s2871_s7] sm:$0xff]  ;;  %s2434_s16 = smov 112   ;;  %v454_v34 = vunpack.c.l.s4 %v2435_v33  ;;  %v2436_v35 = vmov 1934713408   ;;  %vm1011_vm2 = vcmask 64512   ;;  %vm1259_vm3 = vcmask 1043456  }
  0x43   : > { %s1975_s24 = sshll.u32 %s369_s21, 3  ;;  %2063 = vmatprep.subr.bf16.mxu1 %v2430_v0  ;;  %2055 = vmatprep.subr.bf16.mxu0 %v2430_v0  ;;  %v597_v11 = vsub.s32 1, %v2630_v10  ;;  %v383_v13 = vsub.s32 0, %v2630_v10  ;;  %v657_v26 = vsub.s32 2, %v2630_v10  ;;  %v486_v36 = vunpack.c.l.s4 %v2436_v35  ;;  %s2437_s25 = smov 16  }
  0x44   : > { %s371_s29 = scalar_lea.vmem %s2864_s0, %s1975_s24  ;;  %v455_v37 = vunpack.c.0.s8 %v454_v34  ;;  %s2438_s27 = smov 8   ;;  %vm1602_vm4 = vcmask 130048   ;;  %vm1604_vm5 = vcmask 195584   ;;  %vm1799_vm6 = vcmask 523264  }
  0x45   : > { %v2613_v5 = vld [vmem:[%s371_s29] sm:$0xff]  ;;  %v598_v14 = vrot.slane %v2636_v12, %v597_v11  ;;  %v384_v15 = vrot.slane %v2636_v12, %v383_v13  ;;  %v658_v27 = vrot.slane %v2636_v12, %v657_v26  ;;  %v487_v40 = vunpack.c.0.s8 %v486_v36  ;;  %s2439_s29 = smov 24   ;;  %s2014_s23 = sshll.u32 %s2512_s13, 7 }
  0x46   : > { %v376_v6 = vpack.c.bf16 %v2613_v5, %v2613_v5  ;;  %2064 = vmatpush3.bf16.msra.mxu1 %v2237_v3  ;;  %2056 = vmatpush3.bf16.msra.mxu0 %v2238_v4  ;;  %v2651_v41 = vsub.s32 %v455_v37, %v2630_v10  ;;  %s1872_s26 = scalar_lea.hbm %s2873_s9, %s2014_s23  ;;  %p2884_p12 = scmp.ne.s32.totalorder %s2876_s19, 0 }
  0x47   : > { %2077 = vmatprep.subr.bf16.mxu1 %v2430_v0  ;;  %2069 = vmatprep.subr.bf16.mxu0 %v2430_v0  ;;  %v2654_v48 = vsub.s32 %v487_v40, %v2630_v10 }
  0x49   : > { %2066 = vmatmul.mubr.msk.bf16.vlgmr.msra.gmra.mxu1 %vm397_vm1, %v376_v6  ;;  %2058 = vmatmul.mubr.msk.bf16.vlgmr.msra.gmra.mxu0 %vm397_vm1, %v376_v6 }
  0x4a   : > { %2079 = vmatprep.mubr.msk.bf16.mxu1 %vm2431_vm0, %v2430_v0  ;;  %2073 = vmatprep.mubr.msk.bf16.mxu0 %vm2431_vm0, %v2430_v0 }
  0x4b   : > { %2070 = vmatpush3.bf16.msra.mxu0 %v2239_v7 }
  0x4c   : > { %2071 = vmatprep.subr.bf16.mxu0 %v2430_v0 }
  0x4f   : > { %2072 = vmatpush3.bf16.msra.mxu0 %v2240_v8 }
  0x50   : > { %2083 = vmatprep.subr.bf16.mxu0 %v2430_v0 }
  0x52   : > { %2074 = vmatmul.mubr.msk.bf16.vlgmr.msra.gmra.mxu0 %vm397_vm1, %v376_v6 }
  0x53   : > { %2085 = vmatprep.mubr.msk.bf16.mxu0 %vm2431_vm0, %v2430_v0 }
 0x109   : > { %v645_v16 = vpop.f32.mrf.mxu1  ;;  %v435_v18 = vpop.f32.mrf.mxu0 }
 0x10a   : > { %v646_v17 = vadd.f32 %v645_v16, %v598_v14  ;;  %v436_v20 = vadd.f32 %v435_v18, %v384_v15 }
 0x10b   : > { %v2067_v19 = vpop.f32.mrf.mxu1  ;;  %v2059_v21 = vpop.f32.mrf.mxu0 }
 0x10c   : > { %718 = vrot.lane.b32.xlu1 %v646_v17, %s2432_s28  ;;  %712 = vrot.lane.b32.xlu0 %v646_v17, %s2433_s14 }
 0x10d   : > { %v648_v22 = vpop.f32.mrf.mxu1  ;;  %v438_v23 = vpop.f32.mrf.mxu0 }
 0x10f   : > { %v2068_v24 = vpop.f32.mrf.mxu1  ;;  %v2060_v25 = vpop.f32.mrf.mxu0 }
 0x110   : > { %715 = vrot.lane.b32.xlu0 %v646_v17, %s2434_s16  ;;  %442 = vrot.lane.b32.xlu1 %v436_v20, %s2433_s14 }
 0x112   : > { %v705_v28 = vpop.f32.mrf.mxu0 }
 0x113   : > { %v2647_v29 = vadd.f32 %v705_v28, %v658_v27 }
 0x114   : > { %445 = vrot.lane.b32.xlu0 %v436_v20, %s2434_s16  ;;  %448 = vrot.lane.b32.xlu1 %v436_v20, %s2432_s28  ;;  %v2075_v30 = vpop.f32.mrf.mxu0 }
 0x116   : > { %v708_v31 = vpop.f32.mrf.mxu0 }
 0x118   : > { %862 = vrot.lane.b32.xlu0 %v2647_v29, %s2433_s14  ;;  %v2076_v32 = vpop.f32.mrf.mxu0 }
 0x17e   : > { %v719_v38 = vpop.permute.xlu1 %718  ;;  %v713_v39 = vpop.permute.xlu0 %712 }
 0x17f   : > { %v737_v42 = vcombine.low %v713_v39, %v719_v38  ;;  %v738_v43 = vcombine.high %v713_v39, %v719_v38 }
 0x181   : > { %v745_v49 = vrot.slane %v737_v42, %v2651_v41  ;;  %v752_v50 = vrot.slane %v738_v43, %v2651_v41 }
 0x182   : > { %v716_v44 = vpop.permute.xlu0 %715  ;;  %v443_v45 = vpop.permute.xlu1 %442 }
 0x183   : > { %v721_v46 = vcombine.low %v646_v17, %v716_v44  ;;  %v722_v47 = vcombine.high %v646_v17, %v716_v44 }
 0x185   : > { %v729_v51 = vrot.slane %v721_v46, %v2651_v41  ;;  %v736_v52 = vrot.slane %v722_v47, %v2651_v41 }
 0x186   : > { %v446_v53 = vpop.permute.xlu0 %445  ;;  %v449_v54 = vpop.permute.xlu1 %448 }
 0x187   : > { %v753_v55 = vcombine.low %v729_v51, %v745_v49  ;;  %v754_v56 = vcombine.high %v729_v51, %v745_v49  ;;  %v769_v57 = vcombine.low %v736_v52, %v752_v50  ;;  %v770_v58 = vcombine.high %v736_v52, %v752_v50 }
 0x188   : > { %v451_v59 = vcombine.low %v436_v20, %v446_v53  ;;  %v452_v60 = vcombine.high %v436_v20, %v446_v53  ;;  %v467_v61 = vcombine.low %v443_v45, %v449_v54  ;;  %v468_v62 = vcombine.high %v443_v45, %v449_v54 }
 0x189   : > { %v761_v63 = vrot.slane %v753_v55, %v2654_v48  ;;  %v768_v1 = vrot.slane %v754_v56, %v2654_v48  ;;  %v777_v2 = vrot.slane %v769_v57, %v2654_v48  ;;  %v784_v3 = vrot.slane %v770_v58, %v2654_v48 }
 0x18a   : > { %v459_v4 = vrot.slane %v451_v59, %v2651_v41  ;;  %v466_v6 = vrot.slane %v452_v60, %v2651_v41  ;;  %v475_v7 = vrot.slane %v467_v61, %v2651_v41  ;;  %v482_v8 = vrot.slane %v468_v62, %v2651_v41 }
 0x18b   : > { %v789_v9 = vcombine.low %v761_v63, %v768_v1  ;;  %v1987_v11 = vcombine.high %v761_v63, %v768_v1  ;;  %v805_v13 = vcombine.low %v777_v2, %v784_v3  ;;  %v1988_v14 = vcombine.high %v777_v2, %v784_v3 }
 0x18c   : > { %v483_v15 = vcombine.low %v459_v4, %v475_v7  ;;  %v484_v16 = vcombine.high %v459_v4, %v475_v7  ;;  %v499_v17 = vcombine.low %v466_v6, %v482_v8  ;;  %v500_v18 = vcombine.high %v466_v6, %v482_v8 }
 0x18d   : > { %v796_v19 = vrot.slane %v789_v9, %v2651_v41  ;;  %v804_v20 = vrot.slane %v1987_v11, %v2651_v41  ;;  %v812_v21 = vrot.slane %v805_v13, %v2651_v41  ;;  %v820_v22 = vrot.slane %v1988_v14, %v2651_v41 }
 0x18e   : > { %v491_v23 = vrot.slane %v483_v15, %v2654_v48  ;;  %v498_v24 = vrot.slane %v484_v16, %v2654_v48  ;;  %v507_v25 = vrot.slane %v499_v17, %v2654_v48  ;;  %v514_v26 = vrot.slane %v500_v18, %v2654_v48 }
 0x18f   : > { %v821_v27 = vcombine.low %v796_v19, %v804_v20  ;;  %v837_v28 = vcombine.low %v812_v21, %v820_v22  ;;  %v822_v30 = vcombine.high %v796_v19, %v804_v20  ;;  %v838_v31 = vcombine.high %v812_v21, %v820_v22 }
 0x190   : > { %v519_v32 = vcombine.low %v491_v23, %v498_v24  ;;  %v1979_v33 = vcombine.high %v491_v23, %v498_v24  ;;  %v535_v34 = vcombine.low %v507_v25, %v514_v26  ;;  %v1980_v35 = vcombine.high %v507_v25, %v514_v26 }
 0x191   : > { %v829_v36 = vrot.slane %v821_v27, %v2654_v48  ;;  %v845_v37 = vrot.slane %v837_v28, %v2654_v48  ;;  %v836_v45 = vrot.slane %v822_v30, %v2654_v48  ;;  %v852_v46 = vrot.slane %v838_v31, %v2654_v48 }
 0x192   : > { %v526_v38 = vrot.slane %v519_v32, %v2651_v41  ;;  %v534_v39 = vrot.slane %v1979_v33, %v2651_v41  ;;  %v542_v40 = vrot.slane %v535_v34, %v2651_v41  ;;  %v550_v42 = vrot.slane %v1980_v35, %v2651_v41  ;;  %v863_v35 = vpop.permute.xlu0 %862 }
 0x193   : > { %v853_v43 = vcombine.low %v829_v36, %v845_v37  ;;  %v854_v44 = vcombine.high %v829_v36, %v845_v37  ;;  %v855_v56 = vcombine.low %v836_v45, %v852_v46  ;;  %v856_v57 = vcombine.high %v836_v45, %v852_v46 }
 0x194   : > { %v551_v47 = vcombine.low %v526_v38, %v534_v39  ;;  %v567_v49 = vcombine.low %v542_v40, %v550_v42  ;;  %v552_v58 = vcombine.high %v526_v38, %v534_v39  ;;  %v568_v59 = vcombine.high %v542_v40, %v550_v42 }
 0x195   : > { %v857_v50 = vpack.c.bf16 %v853_v43, %v853_v43  ;;  %v858_v51 = vpack.c.bf16 %v854_v44, %v854_v44  ;;  %v859_v62 = vpack.c.bf16 %v855_v56, %v855_v56  ;;  %v860_v63 = vpack.c.bf16 %v856_v57, %v856_v57 }
 0x196   : > { %v559_v52 = vrot.slane %v551_v47, %v2654_v48  ;;  %v575_v53 = vrot.slane %v567_v49, %v2654_v48  ;;  %v566_v3 = vrot.slane %v552_v58, %v2654_v48  ;;  %v582_v4 = vrot.slane %v568_v59, %v2654_v48 }
 0x197   : > { %v1016_v54 = vsel %vm1011_vm2, %v857_v50, 0  ;;  %v1062_v55 = vsel %vm1011_vm2, %v858_v51, 0  ;;  %v1108_v6 = vsel %vm1011_vm2, %v859_v62, 0  ;;  %v1154_v7 = vsel %vm1011_vm2, %v860_v63, 0 }
 0x198   : > { %2078 = vmatpush3.bf16.xpose.msra.mxu1 %v1016_v54  ;;  %2084 = vmatpush3.bf16.xpose.msra.mxu0 %v1062_v55  ;;  %v583_v60 = vcombine.low %v559_v52, %v575_v53  ;;  %v584_v61 = vcombine.high %v559_v52, %v575_v53  ;;  %v585_v8 = vcombine.low %v566_v3, %v582_v4 }
 0x199   : > { %2089 = vmatprep.subr.bf16.mxu1 %v2430_v0  ;;  %2095 = vmatprep.subr.bf16.mxu0 %v2430_v0  ;;  %v586_v9 = vcombine.high %v566_v3, %v582_v4 }
 0x19a   : > { %v587_v1 = vpack.c.bf16 %v583_v60, %v583_v60  ;;  %v588_v2 = vpack.c.bf16 %v584_v61, %v584_v61  ;;  %v589_v11 = vpack.c.bf16 %v585_v8, %v585_v8 }
 0x19b   : > { %v590_v13 = vpack.c.bf16 %v586_v9, %v586_v9 }
 0x19f   : > { %2080 = vmatmul.mubr.msk.bf16.vlgmr.msra.gmra.mxu1 %vm1011_vm2, %v587_v1  ;;  %2086 = vmatmul.mubr.msk.bf16.vlgmr.msra.gmra.mxu0 %vm1011_vm2, %v588_v2 }
 0x1a0   : > { %2090 = vmatpush3.bf16.xpose.msra.mxu1 %v1108_v6  ;;  %2096 = vmatpush3.bf16.xpose.msra.mxu0 %v1154_v7 }
 0x1a1   : > { %2091 = vmatprep.mubr.msk.bf16.mxu1 %vm2431_vm0, %v2430_v0  ;;  %2097 = vmatprep.mubr.msk.bf16.mxu0 %vm2431_vm0, %v2430_v0 }
 0x1a2   : > { %2101 = vmatprep.subr.bf16.mxu1 %v2430_v0  ;;  %2107 = vmatprep.subr.bf16.mxu0 %v2430_v0 }
 0x1a7   : > { %2092 = vmatmul.mubr.msk.bf16.vlgmr.msra.gmra.mxu1 %vm1011_vm2, %v589_v11  ;;  %2098 = vmatmul.mubr.msk.bf16.vlgmr.msra.gmra.mxu0 %vm1011_vm2, %v590_v13 }
 0x1a8   : > { %2103 = vmatprep.mubr.msk.bf16.mxu1 %vm2431_vm0, %v2430_v0  ;;  %2109 = vmatprep.mubr.msk.bf16.mxu0 %vm2431_vm0, %v2430_v0 }
 0x25f   : > { %v1052_v14 = vpop.f32.mrf.mxu1  ;;  %v1098_v15 = vpop.f32.mrf.mxu0 }
 0x260   : > { %v1199_v16 = vsel %vm1011_vm2, %v1098_v15, -inf  ;;  %v1196_v17 = vsel %vm1011_vm2, %v1052_v14, -inf }
 0x261   : > { %1200 = vmax.xlane.f32.xlu1 %v1199_v16  ;;  %v2087_v18 = vpop.f32.mrf.mxu0  ;;  %1197 = vmax.xlane.f32.xlu0 %v1196_v17  ;;  %v2081_v19 = vpop.f32.mrf.mxu1 }
 0x263   : > { %v1055_v20 = vpop.f32.mrf.mxu1  ;;  %v1101_v21 = vpop.f32.mrf.mxu0 }
 0x265   : > { %v2082_v22 = vpop.f32.mrf.mxu1  ;;  %v2088_v23 = vpop.f32.mrf.mxu0 }
 0x267   : > { %v2710_v24 = vpop.f32.mrf.mxu1  ;;  %v2712_v25 = vpop.f32.mrf.mxu0 }
 0x268   : > { %v1205_v33 = vsel %vm1011_vm2, %v2712_v25, -inf  ;;  %v1202_v34 = vsel %vm1011_vm2, %v2710_v24, -inf }
 0x269   : > { %v2093_v26 = vpop.f32.mrf.mxu1  ;;  %v2099_v27 = vpop.f32.mrf.mxu0 }
 0x26b   : > { %v1147_v28 = vpop.f32.mrf.mxu1  ;;  %v1193_v30 = vpop.f32.mrf.mxu0 }
 0x26d   : > { %v2094_v31 = vpop.f32.mrf.mxu1  ;;  %v2100_v32 = vpop.f32.mrf.mxu0 }
 0x272   : > { %865 = vrot.lane.b32.xlu1 %v2647_v29, %s2434_s16  ;;  %s2440_s16 = smov [#allocation8]  }
 0x277   : > { %868 = vrot.lane.b32.xlu0 %v2647_v29, %s2432_s28 }
 0x296   : > { %1206 = vmax.xlane.f32.xlu0 %v1205_v33  ;;  %1203 = vmax.xlane.f32.xlu1 %v1202_v34 }
 0x2ea   : > { %v2722_v36 = vpop.xlane.xlu1 %1200  ;;  %v2724_v37 = vpop.xlane.xlu0 %1197 }
 0x2eb   : > { %v1221_v38 = vsub.f32 %v1098_v15, %v2722_v36  ;;  %v1220_v39 = vsub.f32 %v1052_v14, %v2724_v37 }
 0x2ed   : > { %v1226_v40 = vmul.f32 1.442695, %v1221_v38  ;;  %v1224_v42 = vmul.f32 1.442695, %v1220_v39 }
 0x2ee   : > { %v866_v43 = vpop.permute.xlu1 %865  ;;  %v869_v44 = vpop.permute.xlu0 %868 }
 0x2ef   : > { %v871_v45 = vcombine.low %v2647_v29, %v866_v43  ;;  %v872_v46 = vcombine.high %v2647_v29, %v866_v43  ;;  %v887_v47 = vcombine.low %v863_v35, %v869_v44  ;;  %2249 = vpow2.f32 %v1226_v40 }
 0x2f0   : > { %v888_v49 = vcombine.high %v863_v35, %v869_v44  ;;  %2251 = vpow2.f32 %v1224_v42 }
 0x2f1   : > { %v879_v50 = vrot.slane %v871_v45, %v2651_v41  ;;  %v886_v51 = vrot.slane %v872_v46, %v2651_v41  ;;  %v895_v52 = vrot.slane %v887_v47, %v2651_v41 }
 0x2f2   : > { %v902_v53 = vrot.slane %v888_v49, %v2651_v41 }
 0x2f3   : > { %v903_v54 = vcombine.low %v879_v50, %v895_v52  ;;  %v904_v55 = vcombine.high %v879_v50, %v895_v52 }
 0x2f4   : > { %v919_v56 = vcombine.low %v886_v51, %v902_v53  ;;  %v920_v57 = vcombine.high %v886_v51, %v902_v53 }
 0x2f5   : > { %v911_v58 = vrot.slane %v903_v54, %v2654_v48  ;;  %v918_v29 = vrot.slane %v904_v55, %v2654_v48 }
 0x2f6   : > { %v927_v59 = vrot.slane %v919_v56, %v2654_v48  ;;  %v934_v60 = vrot.slane %v920_v57, %v2654_v48  ;;  %v1209_v56 = vsub.f32 -inf, %v2722_v36 }
 0x2f7   : > { %v939_v61 = vcombine.low %v911_v58, %v918_v29  ;;  %v1989_v62 = vcombine.high %v911_v58, %v918_v29 }
 0x2f8   : > { %v955_v63 = vcombine.low %v927_v59, %v934_v60  ;;  %v1990_v1 = vcombine.high %v927_v59, %v934_v60  ;;  %v1208_v59 = vsub.f32 -inf, %v2724_v37 }
 0x2f9   : > { %v946_v2 = vrot.slane %v939_v61, %v2651_v41  ;;  %v954_v3 = vrot.slane %v1989_v62, %v2651_v41 }
 0x2fa   : > { %v962_v4 = vrot.slane %v955_v63, %v2651_v41  ;;  %v970_v6 = vrot.slane %v1990_v1, %v2651_v41  ;;  %v1214_v63 = vmul.f32 1.442695, %v1209_v56 }
 0x2fb   : > { %v971_v7 = vcombine.low %v946_v2, %v954_v3  ;;  %v972_v8 = vcombine.high %v946_v2, %v954_v3  ;;  %v1212_v2 = vmul.f32 1.442695, %v1208_v59 }
 0x2fc   : > { %v987_v9 = vcombine.low %v962_v4, %v970_v6  ;;  %v988_v11 = vcombine.high %v962_v4, %v970_v6  ;;  %v2250_v13 = vpop.eup %2249 }
 0x2fd   : > { %v979_v14 = vrot.slane %v971_v7, %v2654_v48  ;;  %v986_v15 = vrot.slane %v972_v8, %v2654_v48  ;;  %v1239_v16 = vsel %vm1011_vm2, %v2250_v13, 0.0  ;;  %v2252_v19 = vpop.eup %2251  ;;  %v1253_v35 = vpack.c.bf16 %v2250_v13, %v2250_v13 }
 0x2fe   : > { %v995_v17 = vrot.slane %v987_v9, %v2654_v48  ;;  %v1002_v18 = vrot.slane %v988_v11, %v2654_v48  ;;  %1240 = vadd.xlane.f32.xlu1 %v1239_v16  ;;  %v1236_v20 = vsel %vm1011_vm2, %v2252_v19, 0.0  ;;  %v1252_v34 = vpack.c.bf16 %v2252_v19, %v2252_v19 }
 0x2ff   : > { %1237 = vadd.xlane.f32.xlu0 %v1236_v20 }
 0x300   : > { %v1003_v21 = vcombine.low %v979_v14, %v995_v17  ;;  %v1004_v22 = vcombine.high %v979_v14, %v995_v17  ;;  %v1005_v23 = vcombine.low %v986_v15, %v1002_v18  ;;  %v1006_v26 = vcombine.high %v986_v15, %v1002_v18 }
 0x302   : > { %v1007_v27 = vpack.c.bf16 %v1003_v21, %v1003_v21  ;;  %v1008_v28 = vpack.c.bf16 %v1004_v22, %v1004_v22  ;;  %v1009_v32 = vpack.c.bf16 %v1005_v23, %v1005_v23  ;;  %v1010_v33 = vpack.c.bf16 %v1006_v26, %v1006_v26 }
 0x304   : > { %v1261_v30 = vsel %vm1259_vm3, %v1007_v27, 0  ;;  %v1307_v31 = vsel %vm1259_vm3, %v1008_v28, 0  ;;  %v1353_v38 = vsel %vm1259_vm3, %v1009_v32, 0  ;;  %v1399_v39 = vsel %vm1259_vm3, %v1010_v33, 0 }
 0x305   : > { %2102 = vmatpush3.bf16.msra.mxu1 %v1261_v30  ;;  %2108 = vmatpush3.bf16.msra.mxu0 %v1307_v31 }
 0x306   : > { %2113 = vmatprep.subr.bf16.mxu1 %v2430_v0  ;;  %2119 = vmatprep.subr.bf16.mxu0 %v2430_v0 }
 0x308   : > { %2104 = vmatmul.mubr.msk.bf16.vlgmr.msra.gmra.mxu1 %vm1011_vm2, %v1252_v34  ;;  %2110 = vmatmul.mubr.msk.bf16.vlgmr.msra.gmra.mxu0 %vm1011_vm2, %v1253_v35 }
 0x309   : > { %2114 = vmatpush3.bf16.msra.mxu1 %v1353_v38  ;;  %2120 = vmatpush3.bf16.msra.mxu0 %v1399_v39 }
 0x30a   : > { %2115 = vmatprep.mubr.msk.bf16.mxu1 %vm2431_vm0, %v2430_v0  ;;  %2121 = vmatprep.mubr.msk.bf16.mxu0 %vm2431_vm0, %v2430_v0 }
 0x30b   : > { %2125 = vmatprep.subr.bf16.mxu1 %v2430_v0  ;;  %2133 = vmatprep.subr.bf16.mxu0 %v2430_v0 }
 0x31f   : > { %v1207_v40 = vpop.xlane.xlu0 %1206  ;;  %v1204_v42 = vpop.xlane.xlu1 %1203 }
 0x320   : > { %v1223_v43 = vsub.f32 %v2712_v25, %v1207_v40  ;;  %v1222_v44 = vsub.f32 %v2710_v24, %v1204_v42  ;;  %v1211_v57 = vsub.f32 -inf, %v1207_v40  ;;  %v1210_v60 = vsub.f32 -inf, %v1204_v42 }
 0x322   : > { %v1230_v45 = vmul.f32 1.442695, %v1223_v43  ;;  %v1228_v46 = vmul.f32 1.442695, %v1222_v44  ;;  %v1218_v1 = vmul.f32 1.442695, %v1211_v57 }
 0x323   : > { %v1216_v3 = vmul.f32 1.442695, %v1210_v60 }
 0x324   : > { %2253 = vpow2.f32 %v1230_v45 }
 0x325   : > { %2255 = vpow2.f32 %v1228_v46 }
 0x326   : > { %2257 = vpow2.f32 %v1214_v63 }
 0x327   : > { %2259 = vpow2.f32 %v1218_v1 }
 0x328   : > { %2261 = vpow2.f32 %v1212_v2 }
 0x329   : > { %2263 = vpow2.f32 %v1216_v3 }
 0x331   : > { %v2254_v47 = vpop.eup %2253 }
 0x332   : > { %v1245_v49 = vsel %vm1011_vm2, %v2254_v47, 0.0  ;;  %v1255_v50 = vpack.c.bf16 %v2254_v47, %v2254_v47  ;;  %v2256_v51 = vpop.eup %2255 }
 0x333   : > { %1246 = vadd.xlane.f32.xlu1 %v1245_v49  ;;  %v1242_v52 = vsel %vm1011_vm2, %v2256_v51, 0.0  ;;  %v1254_v53 = vpack.c.bf16 %v2256_v51, %v2256_v51  ;;  %v2258_v6 = vpop.eup %2257 }
 0x334   : > { %2122 = vmatmul.mubr.msk.bf16.vlgmr.msra.gmra.mxu0 %vm1011_vm2, %v1255_v50  ;;  %1243 = vadd.xlane.f32.xlu0 %v1242_v52  ;;  %v2260_v7 = vpop.eup %2259  ;;  %v1233_v11 = vmul.f32 0.0, %v2258_v6 }
 0x335   : > { %2137 = vmatprep.mubr.msk.bf16.mxu0 %vm2431_vm0, %v2430_v0  ;;  %2116 = vmatmul.mubr.msk.bf16.vlgmr.msra.gmra.mxu1 %vm1011_vm2, %v1254_v53  ;;  %v2262_v8 = vpop.eup %2261  ;;  %v1235_v37 = vmul.f32 0.0, %v2260_v7 }
 0x336   : > { %2129 = vmatprep.mubr.msk.bf16.mxu1 %vm2431_vm0, %v2430_v0  ;;  %v2264_v9 = vpop.eup %2263  ;;  %v1232_v14 = vmul.f32 0.0, %v2262_v8 }
 0x337   : > { %v1234_v17 = vmul.f32 0.0, %v2264_v9 }
 0x387   : > { %v1241_v4 = vpop.xlane.xlu1 %1240 }
 0x388   : > { %v1238_v36 = vpop.xlane.xlu0 %1237  ;;  %v1249_v15 = vadd.f32 %v1241_v4, %v1233_v11 }
 0x389   : > { %v1248_v19 = vadd.f32 %v1238_v36, %v1232_v14 }
 0x38a   : > { %2265 = vrcp.f32 %v1249_v15 }
 0x397   : > { %v2266_v23 = vpop.eup %2265 }
 0x3bc   : > { %v1247_v13 = vpop.xlane.xlu1 %1246 }
 0x3bd   : > { %v1244_v16 = vpop.xlane.xlu0 %1243  ;;  %v1251_v18 = vadd.f32 %v1247_v13, %v1235_v37 }
 0x3be   : > { %v1250_v20 = vadd.f32 %v1244_v16, %v1234_v17 }
 0x3bf   : > { %2267 = vrcp.f32 %v1251_v18 }
 0x3c0   : > { %2269 = vrcp.f32 %v1248_v19 }
 0x3c1   : > { %2271 = vrcp.f32 %v1250_v20 }
 0x3c8   : > { %v1297_v24 = vpop.f32.mrf.mxu1  ;;  %v1343_v25 = vpop.f32.mrf.mxu0 }
 0x3c9   : > { %v1442_v21 = vadd.f32 %v1343_v25, %v1233_v11  ;;  %v1441_v26 = vadd.f32 %v1297_v24, %v1232_v14 }
 0x3ca   : > { %v2105_v54 = vpop.f32.mrf.mxu1  ;;  %v2111_v55 = vpop.f32.mrf.mxu0 }
 0x3cb   : > { %v1450_v33 = vmul.f32 %v2266_v23, %v1442_v21  ;;  %v2241_v54 = vld [vmem:[#allocation5 + $0x8] sm:$0xff]  }
 0x3cc   : > { %v1300_v58 = vpop.f32.mrf.mxu1  ;;  %v1346_v29 = vpop.f32.mrf.mxu0  ;;  %2126 = vmatpush3.bf16.msra.mxu1 %v2241_v54 }
 0x3cd   : > { %v2268_v28 = vpop.eup %2267  ;;  %2127 = vmatprep.subr.bf16.mxu1 %v2430_v0 }
 0x3ce   : > { %v2106_v61 = vpop.f32.mrf.mxu1  ;;  %v2112_v62 = vpop.f32.mrf.mxu0 }
 0x3cf   : > { %v2270_v32 = vpop.eup %2269  ;;  %v2242_v62 = vld [vmem:[#allocation5] sm:$0xff]  }
 0x3d0   : > { %v2272_v38 = vpop.eup %2271  ;;  %v1449_v42 = vmul.f32 %v2270_v32, %v1441_v26  ;;  %2128 = vmatpush3.bf16.msra.mxu1 %v2242_v62 }
 0x3d1   : > { %2141 = vmatprep.subr.bf16.mxu1 %v2430_v0 }
 0x3f4   : > { %v1435_v22 = vpop.f32.mrf.mxu0 }
 0x3f5   : > { %v1444_v27 = vadd.f32 %v1435_v22, %v1235_v37  ;;  %v1389_v30 = vpop.f32.mrf.mxu1 }
 0x3f6   : > { %v2123_v31 = vpop.f32.mrf.mxu0  ;;  %v1443_v34 = vadd.f32 %v1389_v30, %v1234_v17 }
 0x3f7   : > { %v1452_v35 = vmul.f32 %v2268_v28, %v1444_v27  ;;  %v2117_v39 = vpop.f32.mrf.mxu1  ;;  %v1613_v28 = vsub.s32 3, %v2630_v10 }
 0x3f8   : > { %v1438_v40 = vpop.f32.mrf.mxu0  ;;  %v1451_v43 = vmul.f32 %v2272_v38, %v1443_v34 }
 0x3f9   : > { %v1469_v44 = vcombine.low %v1450_v33, %v1452_v35  ;;  %v1470_v45 = vcombine.high %v1450_v33, %v1452_v35  ;;  %v1392_v46 = vpop.f32.mrf.mxu1  ;;  %v1614_v30 = vrot.slane %v2636_v12, %v1613_v28 }
 0x3fa   : > { %v2124_v47 = vpop.f32.mrf.mxu0  ;;  %v1453_v49 = vcombine.low %v1449_v42, %v1451_v43  ;;  %v1454_v50 = vcombine.high %v1449_v42, %v1451_v43  ;;  %v2243_v46 = vld [vmem:[#allocation7 + $0x8] sm:$0xff]  }
 0x3fb   : > { %v1477_v51 = vrot.slane %v1469_v44, %v2651_v41  ;;  %v1484_v52 = vrot.slane %v1470_v45, %v2651_v41  ;;  %v2118_v53 = vpop.f32.mrf.mxu1  ;;  %2134 = vmatpush3.bf16.msra.mxu0 %v2243_v46  ;;  %v2244_v47 = vld [vmem:[#allocation7] sm:$0xff]  }
 0x3fc   : > { %v1461_v24 = vrot.slane %v1453_v49, %v2651_v41  ;;  %v1468_v25 = vrot.slane %v1454_v50, %v2651_v41  ;;  %2135 = vmatprep.subr.bf16.mxu0 %v2430_v0  ;;  %v2246_v49 = vld [vmem:[%s2870_s6 + $0x10] sm:$0xff]   ;;  %v1687_v53 = vsub.s32 4, %v2630_v10 }
 0x3fe   : > { %v1485_v55 = vcombine.low %v1461_v24, %v1477_v51  ;;  %v1486_v56 = vcombine.high %v1461_v24, %v1477_v51  ;;  %v1501_v57 = vcombine.low %v1468_v25, %v1484_v52  ;;  %v1502_v58 = vcombine.high %v1468_v25, %v1484_v52 }
 0x3ff   : > { %2136 = vmatpush3.bf16.msra.mxu0 %v2244_v47  ;;  %v1692_v24 = vsub.s32 5, %v2630_v10  ;;  %v1688_v25 = vrot.slane %v2636_v12, %v1687_v53 }
 0x400   : > { %v1493_v29 = vrot.slane %v1485_v55, %v2654_v48  ;;  %v1500_v59 = vrot.slane %v1486_v56, %v2654_v48  ;;  %v1509_v60 = vrot.slane %v1501_v57, %v2654_v48  ;;  %v1516_v61 = vrot.slane %v1502_v58, %v2654_v48 }
 0x401   : > { %v1693_v56 = vrot.slane %v2636_v12, %v1692_v24 }
 0x402   : > { %v1521_v63 = vcombine.low %v1493_v29, %v1500_v59  ;;  %v1999_v1 = vcombine.high %v1493_v29, %v1500_v59  ;;  %v1537_v2 = vcombine.low %v1509_v60, %v1516_v61  ;;  %v2000_v3 = vcombine.high %v1509_v60, %v1516_v61  ;;  %v2247_v59 = vld [vmem:[%s2870_s6 + $0x8] sm:$0xff]   ;;  %v2248_v60 = vld [vmem:[%s2870_s6] sm:$0xff]  }
 0x403   : > { %v2004_v61 = vld [vmem:[%s2872_s8] ss:$0 sm:$0xff] }
 0x404   : > { %v1528_v4 = vrot.slane %v1521_v63, %v2651_v41  ;;  %v1536_v6 = vrot.slane %v1999_v1, %v2651_v41  ;;  %v1544_v7 = vrot.slane %v1537_v2, %v2651_v41  ;;  %v1552_v36 = vrot.slane %v2000_v3, %v2651_v41 }
 0x406   : > { %v1554_v8 = vcombine.high %v1528_v4, %v1536_v6  ;;  %v1570_v9 = vcombine.high %v1544_v7, %v1552_v36  ;;  %v1553_v11 = vcombine.low %v1528_v4, %v1536_v6  ;;  %v1569_v13 = vcombine.low %v1544_v7, %v1552_v36 }
 0x408   : > { %v1568_v37 = vrot.slane %v1554_v8, %v2654_v48  ;;  %v1584_v14 = vrot.slane %v1570_v9, %v2654_v48  ;;  %v1561_v15 = vrot.slane %v1553_v11, %v2654_v48  ;;  %v1577_v16 = vrot.slane %v1569_v13, %v2654_v48 }
 0x40a   : > { %v1587_v17 = vcombine.low %v1568_v37, %v1584_v14  ;;  %v1586_v18 = vcombine.high %v1561_v15, %v1577_v16  ;;  %v1588_v19 = vcombine.high %v1568_v37, %v1584_v14  ;;  %v1585_v20 = vcombine.low %v1561_v15, %v1577_v16 }
 0x40c   : > { %1594 = vrot.lane.b32.xlu1 %v1587_v17, %s2437_s25  ;;  %1590 = vrot.lane.b32.xlu0 %v1586_v18, %s2438_s27  ;;  %s365_s27 = sand.u32 1, %s2415_s10   ;;  %s2359_s25 = sshll.u32 %s2440_s16, 4  ;;  %s2360_s25 = int_to_ptr.vmem [resolvable:$false] %s2359_s25 }
 0x40d   : > { %s1861_s28 = scalar_lea.sflag [#allocation4], %s365_s27  ;;  %s2361_s13 = scalar_lea.vmem %s2360_s25, 256 }
 0x410   : > { %1598 = vrot.lane.b32.xlu1 %v1588_v19, %s2439_s29  ;;  %s1974_s29 = sshll.u32 %s365_s27, 3 }
 0x411   : > { %s367_s17 = scalar_lea.vmem [#allocation8], %s1974_s29 }
 0x412   : > { %s1874_s22 = sshll.u32 %s367_s17, 4  ;;  %s1875_s22 = int_to_ptr.vmem [resolvable:$true] %s1874_s22 }
 0x413   : > { %s2355_s14 = scalar_lea.vmem %s1875_s22, 128  ;;  %p2362_p7 = scmp.lt.s32.totalorder %s1875_s22, %s2360_s25 }
 0x414   : > { %p2356_p10 = scmp.ne.s32.totalorder %s1875_s22, %s2355_s14  ;;  %p2363_p8 = scmp.lt.s32.totalorder %s2361_s13, %s2355_s14 }
 0x416   : > { %p2357_p2 = pnand %p2356_p10, %p2884_p12  ;;  %p2364_p11 = por %p2363_p8, %p2362_p7 }
 0x418   : > { %p2358_p4 = pneg %p2357_p2 }
 0x41a   : > { %p2365_p0 = pnand %p2364_p11, %p2358_p4 }
 0x47e   : > { %v1595_v41 = vpop.permute.xlu1 %1594  ;;  %v1591_v21 = vpop.permute.xlu0 %1590 }
 0x47f   : > { %v1601_v22 = vsel %vm1011_vm2, %v1585_v20, %v1591_v21 }
 0x480   : > { %v1603_v26 = vsel %vm1602_vm4, %v1601_v22, %v1595_v41 }
 0x482   : > { %v1599_v23 = vpop.permute.xlu1 %1598 }
 0x483   : > { %v1605_v27 = vsel %vm1604_vm5, %v1603_v26, %v1599_v23 }
 0x484   : > { %v1606_v48 = vpack.c.bf16 %v1605_v27, %v1605_v27 }
 0x486   : > { %2130 = vmatmul.mubr.msk.bf16.vlgmr.msra.gmra.mxu1 %vm397_vm1, %v1606_v48 }
 0x487   : > { %2149 = vmatprep.mubr.msk.bf16.mxu1 %vm2431_vm0, %v2430_v0 }
 0x546   : > { %v1664_v31 = vpop.f32.mrf.mxu1 }
 0x547   : > { %v1665_v32 = vadd.f32 %v1664_v31, %v1614_v30 }
 0x548   : > { %v2131_v33 = vpop.f32.mrf.mxu1 }
 0x549   : > { %v1670_v34 = vadd.f32 %v1665_v32, %v2613_v5  ;;  %v2245_v5 = vld [vmem:[%s2870_s6 + $0x18] sm:$0xff]  }
 0x54a   : > { %v1667_v35 = vpop.f32.mrf.mxu1  ;;  %2142 = vmatpush3.bf16.msra.mxu1 %v2245_v5 }
 0x54b   : > { %v1671_v38 = vsel %vm397_vm1, %v1670_v34, 0.0  ;;  %2143 = vmatprep.subr.bf16.mxu1 %v2430_v0 }
 0x54c   : > { %1672 = vadd.xlane.f32.xlu0 %v1671_v38  ;;  %v2132_v39 = vpop.f32.mrf.mxu1 }
 0x54e   : > { %2144 = vmatpush3.bf16.msra.mxu1 %v2246_v49 }
 0x54f   : > { %2145 = vmatprep.subr.bf16.mxu1 %v2430_v0 }
 0x552   : > { %2146 = vmatpush3.bf16.msra.mxu1 %v2247_v59 }
 0x553   : > { %2147 = vmatprep.subr.bf16.mxu1 %v2430_v0  ;;  %v1773_v0 = vsub.s32 6, %v2630_v10 }
 0x555   : > { %v1774_v7 = vrot.slane %v2636_v12, %v1773_v0 }
 0x556   : > { %2148 = vmatpush3.bf16.msra.mxu1 %v2248_v60 }
 0x5d5   : > { %v1673_v40 = vpop.xlane.xlu0 %1672 }
 0x5d6   : > { %v1675_v42 = vmul.f32 0.03125, %v1673_v40 }
 0x5d8   : > { %v1676_v43 = vsub.f32 %v1670_v34, %v1675_v42 }
 0x5da   : > { %v1677_v44 = vmul.f32 %v1676_v43, %v1676_v43 }
 0x5dc   : > { %v1678_v45 = vsel %vm397_vm1, %v1677_v44, 0.0 }
 0x5dd   : > { %1679 = vadd.xlane.f32.xlu1 %v1678_v45 }
 0x666   : > { %v1680_v50 = vpop.xlane.xlu1 %1679 }
 0x667   : > { %v1681_v51 = vmul.f32 0.03125, %v1680_v50 }
 0x669   : > { %v1682_v52 = vadd.f32 1e-05, %v1681_v51 }
 0x66b   : > { %2273 = vrsqrt.f32 %v1682_v52 }
 0x678   : > { %v2274_v54 = vpop.eup %2273 }
 0x679   : > { %v1684_v55 = vmul.f32 %v2274_v54, %v1676_v43 }
 0x67b   : > { %v1689_v57 = vmul.f32 %v1688_v25, %v1684_v55 }
 0x67d   : > { %v1694_v58 = vadd.f32 %v1693_v56, %v1689_v57 }
 0x67f   : > { %v1695_v29 = vpack.c.bf16 %v1694_v58, %v1694_v58 }
 0x681   : > { %2138 = vmatmul.mubr.msk.bf16.vlgmr.msra.gmra.mxu0 %vm397_vm1, %v1695_v29 }
 0x741   : > { %v1755_v62 = vpop.f32.mrf.mxu0 }
 0x742   : > { %v1756_v63 = vadd.f32 %v2004_v61, %v1755_v62 }
 0x743   : > { %v2139_v1 = vpop.f32.mrf.mxu0 }
 0x744   : > { %v1761_v2 = vmax.f32 %v1756_v63, 0.0 }
 0x745   : > { %v1758_v3 = vpop.f32.mrf.mxu0 }
 0x746   : > { %v1762_v4 = vpack.c.bf16 %v1761_v2, %v1761_v2 }
 0x747   : > { %v2140_v6 = vpop.f32.mrf.mxu0 }
 0x748   : > { %2150 = vmatmul.mubr.msk.bf16.vlgmr.msra.gmra.mxu1 %vm1799_vm6, %v1762_v4 }
 0x808   : > { %v1837_v36 = vpop.f32.mrf.mxu1 }
 0x809   : > { %v1838_v8 = vadd.f32 %v1837_v36, %v1774_v7 }
 0x80a   : > { %v2151_v9 = vpop.f32.mrf.mxu1 }
 0x80b   : > { %v1843_v11 = vadd.f32 %v1838_v8, %v1694_v58 }
 0x80c   : > { %v1840_v13 = vpop.f32.mrf.mxu1 }
 0x80d   : > { %v1844_v37 = vsel %vm397_vm1, %v1843_v11, 0.0 }
 0x80e   : > { %1845 = vadd.xlane.f32.xlu0 %v1844_v37  ;;  %v2152_v14 = vpop.f32.mrf.mxu1 }
 0x897   : > { %v1846_v15 = vpop.xlane.xlu0 %1845 }
 0x898   : > { %v1847_v16 = vmul.f32 0.03125, %v1846_v15 }
 0x89a   : > { %v1848_v17 = vsub.f32 %v1843_v11, %v1847_v16 }
 0x89c   : > { %v1849_v18 = vmul.f32 %v1848_v17, %v1848_v17 }
 0x89e   : > { %v1850_v19 = vsel %vm397_vm1, %v1849_v18, 0.0 }
 0x89f   : > { %1851 = vadd.xlane.f32.xlu0 %v1850_v19 }
 0x928   : > { %v1852_v10 = vpop.xlane.xlu0 %1851 }
 0x929   : > { %v1853_v12 = vmul.f32 0.03125, %v1852_v10 }
 0x92b   : > { %v1854_v20 = vadd.f32 1e-05, %v1853_v12 }
 0x92d   : > { %2275 = vrsqrt.f32 %v1854_v20 }
 0x93a   : > { %v2276_v41 = vpop.eup %2275 }
 0x93b   : > { %v1856_v21 = vmul.f32 %v2276_v41, %v1848_v17 }
 0x93d   : > { %v1857_v22 = vmul.f32 %v1856_v21, %v1688_v25 }
 0x93f   : > { %v1858_v23 = vadd.f32 %v1857_v22, %v1693_v56 }
 0x941   : > { %1859 = vst.msk [vmem:[%s367_s17] sm:$0xff] %vm397_vm1, %v1858_v23 }
 0x942   : > { %2368 = shalt.err (!%p2365_p0)
}
 0x943   : > { %s2369_s29 = scalar_lea.hbm %s1872_s26, 128  ;;  %s2373_s17 = scalar_lea.hbm %s2873_s9, 256 }
 0x944   : > { %p2370_p6 = scmp.ne.s32.totalorder %s1872_s26, %s2369_s29  ;;  %p2374_p1 = scmp.lt.s32.totalorder %s1872_s26, %s2873_s9 }
 0x945   : > { %p2375_p5 = scmp.lt.s32.totalorder %s2373_s17, %s2369_s29 }
 0x946   : > { %p2371_p9 = pnand %p2370_p6, %p2884_p12 }
 0x947   : > { %p2376_p3 = por %p2375_p5, %p2374_p1 }
 0x948   : > { %p2372_p13 = pneg %p2371_p9 }
 0x94a   : > { %p2377_p10 = pnand %p2376_p3, %p2372_p13 }
 0x94c   : > { %2380 = shalt.err (!%p2377_p10)
}
 0x94d   : > { %2165 = dma.vmem_to_hbm [thread:$0]  (%p2884_p12), %s1875_s22, 128, %s1872_s26, %s1861_s28  }
 0x94e PF: > { %p2187_p2 = scmp.ge.s32.totalorder %s2423_s12, 2  ;;  %s1886_s14 = sand.u32 1, %s2411_s30  }
 0x94f   : > { %p2885_p4 = scmp.ne.s32.totalorder %s2877_s20, 0  ;;  %s1887_s16 = scalar_lea.sflag [#allocation4], %s1886_s14 }
 0x951   : > { %p2178_p7 = pnand %p2187_p2, %p2885_p4 }
 0x953   : > { %p2179_p8 = pneg %p2178_p7 }
 0x955   : > { %2406 = dma.done.wait (%p2179_p8), %s1887_s16, 128  }
 0x956   : > { %2408 = vsyncadd (%p2179_p8), %s1887_s16, 4294967168  ;;  %p21_p11 = scmp.ge.s32.totalorder %s2516_s15, 4   ;;  %s2886_s30 = smov %s2415_s10 }
 0x957   : > { %s2887_s10 = smov %s2419_s11  ;;  %s2888_s11 = smov %s2527_s18 }
 0x958   : > { %s2889_s12 = smov %s2516_s15  ;;  %23 = sbr.rel (!%p21_p11) target bundleno = 5 (0x5), region = 104 }
 0x95d   :  { %1892 = vsyncpa [#allocation3], 1 }
 0x95e   :  { %1894 = vsyncpa [#allocation3 + $0x1], 1 }
 0x95f   :  { %1895 = vsyncpa [#allocation6], 1 }
 0x960   :  { %1896 = vsyncpa [#allocation4], 1 }
 0x961   :  { %1898 = vsyncpa [#allocation4 + $0x1], 1 }

</bundles_post_ra>
